<compile_context>
chip_gen: v6e
topology: v6e:2x2x1
jax: 0.10.0
libtpu: 0.0.40
codegen_flags: <defaults>
</compile_context>

<pallas_src>
import functools

import jax
import jax.numpy as jnp
from jax.experimental import pallas as pl
from jax.experimental.pallas import tpu as pltpu


def mlp_kernel(x_ref, w1_ref, b1_ref, w2_ref, b2_ref, o_ref):
    x = x_ref[...]                      # (TB, obs) f32
    obs = x.shape[1]

    # ---- Layer 1: Linear(obs -> Hp) ----
    if obs <= 8:
        # Tiny contraction: start from the broadcast bias and accumulate unrolled
        # broadcast FMAs on the VPU (avoids an almost-entirely-padded MXU pass).
        h = b1_ref[...] + x[:, 0:1] * w1_ref[0:1, :]          # (1,Hp) + (TB,1)*(1,Hp)
        for k in range(1, obs):
            h = h + x[:, k : k + 1] * w1_ref[k : k + 1, :]
    else:
        h = jnp.dot(x, w1_ref[...], preferred_element_type=jnp.float32) + b1_ref[...]
    h = jnp.maximum(h, 0.0)                                   # ReLU, f32 VPU

    # ---- Layer 2: Linear(Hp -> Ap) on the MXU ----
    out = jnp.dot(h, w2_ref[...], preferred_element_type=jnp.float32)
    o_ref[...] = out + b2_ref[...]                            # lane-dense (TB, Ap) store


def _round_up(v, m):
    return ((v + m - 1) // m) * m


def prepare_params(w1, b1, w2, b2):
    """One-time lane-dense padding of the weights/biases (hoisted out of the hot path).

    w1 : (obs_size, hidden)   float32   (PyTorch weight transposed)
    b1 : (hidden,)            float32
    w2 : (hidden, n_actions)  float32   (PyTorch weight transposed)
    b2 : (n_actions,)         float32
    Returns zero-padded (w1_p, b1_p, w2_p, b2_p) with hidden/action dims padded to 128
    lanes; zero padding composes exactly with ReLU and the zero-padded w2 rows, so
    results after slicing are bit-identical to the unpadded math.
    """
    obs, hidden = w1.shape
    n_actions = w2.shape[1]
    Hp = _round_up(max(hidden, 128), 128)
    Ap = _round_up(max(n_actions, 128), 128)

    w1_p = jnp.zeros((obs, Hp), jnp.float32).at[:, :hidden].set(w1)
    b1_p = jnp.zeros((1, Hp), jnp.float32).at[:, :hidden].set(b1.reshape(1, -1))
    w2_p = jnp.zeros((Hp, Ap), jnp.float32).at[:hidden, :n_actions].set(w2)
    b2_p = jnp.zeros((1, Ap), jnp.float32).at[:, :n_actions].set(b2.reshape(1, -1))
    return w1_p, b1_p, w2_p, b2_p


@functools.partial(jax.jit, static_argnames=("n_actions", "block_b"))
def net_forward(x, w1_p, b1_p, w2_p, b2_p, *, n_actions, block_b=2048):
    """Forward pass of Net as a Pallas kernel.

    x      : (B, obs_size) float32
    w*_p   : pre-padded params from prepare_params()
    returns (B, n_actions) float32
    Note: each distinct (B, block_b) pair recompiles under jit (expected for RL loops).
    """
    B, obs = x.shape
    Hp = w1_p.shape[1]
    Ap = w2_p.shape[1]

    # Grid policy (per perf review): single step for modest batches (1 TC on v5e/v6e,
    # grid is a serial loop and per-step overhead dominates this tiny MLP); tile only
    # when Bp exceeds block_b, which also lets v7x's two cores split the work.
    Bp = _round_up(B, 8)
    if Bp <= block_b:
        TB = Bp
    else:
        TB = block_b            # multiple of 8 assumed (default 2048)
        Bp = _round_up(B, TB)

    # Skip the batch pad entirely when shapes already line up (static check).
    if Bp == B:
        x_p = x
    else:
        x_p = jnp.zeros((Bp, obs), jnp.float32).at[:B].set(x)

    out_p = pl.pallas_call(
        mlp_kernel,
        out_shape=jax.ShapeDtypeStruct((Bp, Ap), jnp.float32),
        grid_spec=pltpu.PrefetchScalarGridSpec(
            num_scalar_prefetch=0,
            grid=(Bp // TB,),
            in_specs=[
                pl.BlockSpec((TB, obs), lambda i: (i, 0)),   # activations: tiled over batch
                pl.BlockSpec((obs, Hp), lambda i: (0, 0)),   # weights/biases: VMEM-resident
                pl.BlockSpec((1, Hp), lambda i: (0, 0)),
                pl.BlockSpec((Hp, Ap), lambda i: (0, 0)),
                pl.BlockSpec((1, Ap), lambda i: (0, 0)),
            ],
            out_specs=pl.BlockSpec((TB, Ap), lambda i: (i, 0)),
        ),
        compiler_params=pltpu.CompilerParams(
            dimension_semantics=("parallel",),               # megacore split on v7x
        ),
    )(x_p, w1_p, b1_p, w2_p, b2_p)

    return out_p[:B, :n_actions]


def init_params(key, obs_size, hidden_size, n_actions):
    """Deterministic init mimicking PyTorch nn.Linear default (U[-1/sqrt(in), 1/sqrt(in)])."""
    k1, k2, k3, k4 = jax.random.split(key, 4)
    lim1 = 1.0 / jnp.sqrt(obs_size)
    lim2 = 1.0 / jnp.sqrt(hidden_size)
    w1 = jax.random.uniform(k1, (obs_size, hidden_size), jnp.float32, -lim1, lim1)
    b1 = jax.random.uniform(k2, (hidden_size,), jnp.float32, -lim1, lim1)
    w2 = jax.random.uniform(k3, (hidden_size, n_actions), jnp.float32, -lim2, lim2)
    b2 = jax.random.uniform(k4, (n_actions,), jnp.float32, -lim2, lim2)
    return w1, b1, w2, b2


if __name__ == "__main__":
    # MountainCar-like sizes: obs_size=2, hidden=32, n_actions=3.
    # Batch = 512 (a CEM population / rollout batch) -> single grid step (TB=512).
    batch, obs_size, hidden_size, n_actions = 512, 2, 32, 3

    key = jax.random.PRNGKey(0)
    kx, kp = jax.random.split(key)
    x = jax.random.normal(kx, (batch, obs_size), dtype=jnp.float32)
    w1, b1, w2, b2 = init_params(kp, obs_size, hidden_size, n_actions)

    # One-time parameter padding (hoisted out of the per-call hot path).
    w1_p, b1_p, w2_p, b2_p = prepare_params(w1, b1, w2, b2)
    w1_p, b1_p, w2_p, b2_p = jax.block_until_ready((w1_p, b1_p, w2_p, b2_p))

    out = net_forward(x, w1_p, b1_p, w2_p, b2_p, n_actions=n_actions)
    out = jax.block_until_ready(out)

    # Pure-JAX reference (identical math to PyTorch's x @ W1.T + b1 -> ReLU -> @ W2.T + b2).
    ref = jnp.maximum(x @ w1 + b1[None, :], 0.0) @ w2 + b2[None, :]
    assert out.shape == (batch, n_actions)
    assert jnp.allclose(out, ref, atol=1e-5, rtol=1e-5)

    # Small-batch path (single tile, TB rounded to 8, no batch pad needed for B=8).
    out_small = jax.block_until_ready(
        net_forward(x[:8], w1_p, b1_p, w2_p, b2_p, n_actions=n_actions))
    assert jnp.allclose(out_small, ref[:8], atol=1e-5, rtol=1e-5)

    # Ragged batch path (B=13 -> padded to 16 rows, pad rows discarded by the slice).
    out_ragged = jax.block_until_ready(
        net_forward(x[:13], w1_p, b1_p, w2_p, b2_p, n_actions=n_actions))
    assert jnp.allclose(out_ragged, ref[:13], atol=1e-5, rtol=1e-5)

    print("KERNEL_OK")
</pallas_src>

<mosaic_0001>
module attributes {stable_mosaic.version = 11 : i64} {
  func.func @mlp_kernel(%arg0: i32, %arg1: memref<512x2xf32, #tpu.memory_space<vmem>>, %arg2: memref<2x128xf32, #tpu.memory_space<vmem>>, %arg3: memref<1x128xf32, #tpu.memory_space<vmem>>, %arg4: memref<128x128xf32, #tpu.memory_space<vmem>>, %arg5: memref<1x128xf32, #tpu.memory_space<vmem>>, %arg6: memref<512x128xf32, #tpu.memory_space<vmem>>) attributes {dimension_semantics = [#tpu.dimension_semantics<parallel>], iteration_bounds = array<i64: 1>, scalar_prefetch = 0 : i64, scratch_operands = 0 : i64, tpu.core_type = #tpu.core_type<tc>, window_params = [{transform_indices = @transform_0, window_bounds = array<i64: 512, 2>}, {pipeline_mode = #tpu.pipeline_mode<synchronous>, transform_indices = @transform_1, window_bounds = array<i64: 2, 128>}, {pipeline_mode = #tpu.pipeline_mode<synchronous>, transform_indices = @transform_2, window_bounds = array<i64: 1, 128>}, {pipeline_mode = #tpu.pipeline_mode<synchronous>, transform_indices = @transform_3, window_bounds = array<i64: 128, 128>}, {pipeline_mode = #tpu.pipeline_mode<synchronous>, transform_indices = @transform_4, window_bounds = array<i64: 1, 128>}, {transform_indices = @transform_5, window_bounds = array<i64: 512, 128>}]} {
    %c0 = arith.constant 0 : index
    %c0_0 = arith.constant 0 : index
    %0 = vector.load %arg1[%c0, %c0_0] : memref<512x2xf32, #tpu.memory_space<vmem>>, vector<512x2xf32>
    %c0_1 = arith.constant 0 : index
    %c0_2 = arith.constant 0 : index
    %1 = vector.load %arg3[%c0_1, %c0_2] : memref<1x128xf32, #tpu.memory_space<vmem>>, vector<1x128xf32>
    %2 = vector.extract_strided_slice %0 {offsets = [0, 0], sizes = [512, 1], strides = [1, 1]} : vector<512x2xf32> to vector<512x1xf32>
    %c0_3 = arith.constant 0 : index
    %c0_4 = arith.constant 0 : index
    %3 = vector.load %arg2[%c0_3, %c0_4] : memref<2x128xf32, #tpu.memory_space<vmem>>, vector<1x128xf32>
    %4 = vector.broadcast %2 : vector<512x1xf32> to vector<512x128xf32>
    %5 = vector.broadcast %3 : vector<1x128xf32> to vector<512x128xf32>
    %6 = arith.mulf %4, %5 : vector<512x128xf32>
    %7 = vector.broadcast %1 : vector<1x128xf32> to vector<512x128xf32>
    %8 = arith.addf %7, %6 : vector<512x128xf32>
    %9 = vector.extract_strided_slice %0 {offsets = [0, 1], sizes = [512, 1], strides = [1, 1]} : vector<512x2xf32> to vector<512x1xf32>
    %c1 = arith.constant 1 : index
    %c0_5 = arith.constant 0 : index
    %10 = vector.load %arg2[%c1, %c0_5] : memref<2x128xf32, #tpu.memory_space<vmem>>, vector<1x128xf32>
    %11 = vector.broadcast %9 : vector<512x1xf32> to vector<512x128xf32>
    %12 = vector.broadcast %10 : vector<1x128xf32> to vector<512x128xf32>
    %13 = arith.mulf %11, %12 : vector<512x128xf32>
    %14 = arith.addf %8, %13 : vector<512x128xf32>
    %cst = arith.constant 0.000000e+00 : f32
    %15 = vector.broadcast %cst : f32 to vector<512x128xf32>
    %16 = arith.maximumf %14, %15 : vector<512x128xf32>
    %c0_6 = arith.constant 0 : index
    %c0_7 = arith.constant 0 : index
    %17 = vector.load %arg4[%c0_6, %c0_7] : memref<128x128xf32, #tpu.memory_space<vmem>>, vector<128x128xf32>
    %cst_8 = arith.constant dense<0.000000e+00> : vector<512x128xf32>
    %18 = tpu.matmul %16, %17, %cst_8 {dimension_numbers = #tpu.dot_dimension_numbers<[1], [0], [0], [1], [0, 0, 1, 1], [], []>} : vector<512x128xf32>, vector<128x128xf32>, vector<512x128xf32> -> vector<512x128xf32>
    %c0_9 = arith.constant 0 : index
    %c0_10 = arith.constant 0 : index
    %19 = vector.load %arg5[%c0_9, %c0_10] : memref<1x128xf32, #tpu.memory_space<vmem>>, vector<1x128xf32>
    %20 = vector.broadcast %19 : vector<1x128xf32> to vector<512x128xf32>
    %21 = arith.addf %18, %20 : vector<512x128xf32>
    %c0_11 = arith.constant 0 : index
    %c0_12 = arith.constant 0 : index
    %22 = vector.load %arg6[%c0_11, %c0_12] : memref<512x128xf32, #tpu.memory_space<vmem>>, vector<512x128xf32>
    tpu.vector_store %arg6[%c0_11, %c0_12], %21 {strides = array<i32>} : memref<512x128xf32, #tpu.memory_space<vmem>>, vector<512x128xf32>,
    return
  }
  func.func @transform_0(%arg0: i32) -> (i32, i32) {
    %c0_i32 = arith.constant 0 : i32
    %c0_i32_0 = arith.constant 0 : i32
    return %arg0, %c0_i32 : i32, i32
  }
  func.func @transform_1(%arg0: i32) -> (i32, i32) {
    %c0_i32 = arith.constant 0 : i32
    %c0_i32_0 = arith.constant 0 : i32
    %c0_i32_1 = arith.constant 0 : i32
    return %c0_i32, %c0_i32_0 : i32, i32
  }
  func.func @transform_2(%arg0: i32) -> (i32, i32) {
    %c0_i32 = arith.constant 0 : i32
    %c0_i32_0 = arith.constant 0 : i32
    %c0_i32_1 = arith.constant 0 : i32
    return %c0_i32, %c0_i32_0 : i32, i32
  }
  func.func @transform_3(%arg0: i32) -> (i32, i32) {
    %c0_i32 = arith.constant 0 : i32
    %c0_i32_0 = arith.constant 0 : i32
    %c0_i32_1 = arith.constant 0 : i32
    return %c0_i32, %c0_i32_0 : i32, i32
  }
  func.func @transform_4(%arg0: i32) -> (i32, i32) {
    %c0_i32 = arith.constant 0 : i32
    %c0_i32_0 = arith.constant 0 : i32
    %c0_i32_1 = arith.constant 0 : i32
    return %c0_i32, %c0_i32_0 : i32, i32
  }
  func.func @transform_5(%arg0: i32) -> (i32, i32) {
    %c0_i32 = arith.constant 0 : i32
    %c0_i32_0 = arith.constant 0 : i32
    return %arg0, %c0_i32 : i32, i32
  }
}

</mosaic_0001>

<bundles_post_ra>
// kernel: net_forward.1
= control target key start
LH: loop header
LB: loop body
LE: loop exit
PB: predicated region body
PF: predicated region fallthrough
CT: control target
= control target key end

     0   :  { %v2903_v0 = vmov 0   ;;  %v2905_v59 = vmov 1   ;;  %s2897_s0 = inlined_call_operand.vmem [shape: f32[512,2], index: 0, kind: input, shape index: {}]   ;;  %s2898_s3 = inlined_call_operand.vmem [shape: f32[128,128], index: 3, kind: input, shape index: {}]   ;;  %s2899_s1 = inlined_call_operand.vmem [shape: f32[2,128], index: 1, kind: input, shape index: {}]   ;;  %s2900_s2 = inlined_call_operand.vmem [shape: f32[1,128], index: 2, kind: input, shape index: {}]   ;;  %s2901_s4 = inlined_call_operand.vmem [shape: f32[1,128], index: 4, kind: input, shape index: {}]   ;;  %s2902_s5 = inlined_call_operand.vmem [shape: f32[512,128], index: 5, kind: output, shape index: {}]  }
   0x1   :  { %1720 = vset.pattern.permute.xlu1 %v2903_v0  ;;  %1719 = vset.pattern.permute.xlu0 %v2903_v0  ;;  %v1776_v1 = vld [vmem:[%s2897_s0 + $0x10] sm:$0xff]  ;;  %v1781_v2 = vld [vmem:[%s2897_s0] sm:$0xff]  ;;  %v1788_v3 = vld [vmem:[%s2897_s0 + $0x18] sm:$0xff] }
   0x2   :  { %98 = vperm.xlu1 %1720, %v1776_v1   ;;  %88 = vperm.xlu0 %1719, %v1781_v2   ;;  %v1793_v4 = vld [vmem:[%s2897_s0 + $0x8] sm:$0xff]  ;;  %v1805_v6 = vld [vmem:[%s2897_s0 + $0x20] sm:$0xff]  ;;  %v1812_v7 = vld [vmem:[%s2897_s0 + $0x38] sm:$0xff] }
   0x3   :  { %v1800_v5 = vld [vmem:[%s2897_s0 + $0x28] sm:$0xff]  ;;  %v1817_v8 = vld [vmem:[%s2897_s0 + $0x30] sm:$0xff]  ;;  %v1829_v10 = vld [vmem:[%s2897_s0 + $0x40] sm:$0xff] }
   0x4   :  { %v1824_v9 = vld [vmem:[%s2897_s0 + $0x48] sm:$0xff]  ;;  %v1836_v11 = vld [vmem:[%s2897_s0 + $0x58] sm:$0xff]  ;;  %v1841_v12 = vld [vmem:[%s2897_s0 + $0x50] sm:$0xff] }
   0x5   :  { %v1848_v13 = vld [vmem:[%s2897_s0 + $0x68] sm:$0xff]  ;;  %v1853_v14 = vld [vmem:[%s2897_s0 + $0x60] sm:$0xff]  ;;  %v1860_v15 = vld [vmem:[%s2897_s0 + $0x78] sm:$0xff] }
   0x6   :  { %103 = vperm.xlu1 %1720, %v1788_v3   ;;  %93 = vperm.xlu0 %1719, %v1793_v4   ;;  %v1865_v16 = vld [vmem:[%s2897_s0 + $0x70] sm:$0xff]  ;;  %v1872_v17 = vld [vmem:[%s2897_s0 + $0x88] sm:$0xff]  ;;  %v1877_v18 = vld [vmem:[%s2897_s0 + $0x80] sm:$0xff] }
   0x7   :  { %v1884_v19 = vld [vmem:[%s2897_s0 + $0x98] sm:$0xff]  ;;  %v1889_v20 = vld [vmem:[%s2897_s0 + $0x90] sm:$0xff]  ;;  %v1896_v21 = vld [vmem:[%s2897_s0 + $0xa8] sm:$0xff] }
   0x8   :  { %v1901_v22 = vld [vmem:[%s2897_s0 + $0xa0] sm:$0xff]  ;;  %v1908_v23 = vld [vmem:[%s2897_s0 + $0xb8] sm:$0xff]  ;;  %v1913_v24 = vld [vmem:[%s2897_s0 + $0xb0] sm:$0xff] }
   0x9   :  { %v1920_v25 = vld [vmem:[%s2897_s0 + $0xc8] sm:$0xff]  ;;  %v1925_v26 = vld [vmem:[%s2897_s0 + $0xc0] sm:$0xff]  ;;  %v1932_v27 = vld [vmem:[%s2897_s0 + $0xd8] sm:$0xff] }
   0xa   :  { %113 = vperm.xlu1 %1720, %v1800_v5   ;;  %108 = vperm.xlu0 %1719, %v1805_v6   ;;  %v1937_v28 = vld [vmem:[%s2897_s0 + $0xd0] sm:$0xff]  ;;  %v1944_v29 = vld [vmem:[%s2897_s0 + $0xe8] sm:$0xff]  ;;  %v1949_v30 = vld [vmem:[%s2897_s0 + $0xe0] sm:$0xff] }
   0xb   :  { %v1956_v31 = vld [vmem:[%s2897_s0 + $0xf8] sm:$0xff]  ;;  %v1961_v32 = vld [vmem:[%s2897_s0 + $0xf0] sm:$0xff]  ;;  %v1968_v33 = vld [vmem:[%s2897_s0 + $0x108] sm:$0xff] }
   0xc   :  { %v1973_v34 = vld [vmem:[%s2897_s0 + $0x100] sm:$0xff]  ;;  %v1980_v35 = vld [vmem:[%s2897_s0 + $0x118] sm:$0xff]  ;;  %v1985_v36 = vld [vmem:[%s2897_s0 + $0x110] sm:$0xff] }
   0xd   :  { %v1012_v37 = vld [vmem:[%s2898_s3 + $0x78] sm:$0xff]  ;;  %v1011_v38 = vld [vmem:[%s2898_s3 + $0x70] sm:$0xff]  ;;  %v1998_v39 = vld [vmem:[%s2897_s0 + $0x128] sm:$0xff] }
   0xe   :  { %123 = vperm.xlu1 %1720, %v1812_v7   ;;  %118 = vperm.xlu0 %1719, %v1817_v8   ;;  %v2003_v40 = vld [vmem:[%s2897_s0 + $0x120] sm:$0xff]  ;;  %v1010_v41 = vld [vmem:[%s2898_s3 + $0x68] sm:$0xff]  ;;  %v2016_v43 = vld [vmem:[%s2897_s0 + $0x138] sm:$0xff] }
   0xf   :  { %1557 = vmatprep.subr.mxu0 %v1012_v37  ;;  %1685 = vmatprep.subr.mxu1 %v1012_v37  ;;  %v1009_v42 = vld [vmem:[%s2898_s3 + $0x60] sm:$0xff]  ;;  %v2021_v44 = vld [vmem:[%s2897_s0 + $0x130] sm:$0xff]  ;;  %v1008_v45 = vld [vmem:[%s2898_s3 + $0x58] sm:$0xff] }
  0x10   :  { %1558 = vmatpush3.msra.mxu0 %v1012_v37  ;;  %1701 = vmatpush3.msra.mxu1 %v1012_v37  ;;  %v2031_v46 = vld [vmem:[%s2897_s0 + $0x148] sm:$0xff]  ;;  %v2036_v47 = vld [vmem:[%s2897_s0 + $0x140] sm:$0xff]  ;;  %v1007_v48 = vld [vmem:[%s2898_s3 + $0x50] sm:$0xff] }
  0x11   :  { %1559 = vmatprep.subr.mxu0 %v1011_v38  ;;  %1686 = vmatprep.subr.mxu1 %v1011_v38  ;;  %v1006_v49 = vld [vmem:[%s2898_s3 + $0x48] sm:$0xff]  ;;  %v2049_v50 = vld [vmem:[%s2897_s0 + $0x158] sm:$0xff]  ;;  %v2054_v51 = vld [vmem:[%s2897_s0 + $0x150] sm:$0xff] }
  0x12   :  { %133 = vperm.xlu1 %1720, %v1824_v9   ;;  %128 = vperm.xlu0 %1719, %v1829_v10   ;;  %v1005_v52 = vld [vmem:[%s2898_s3 + $0x40] sm:$0xff]  ;;  %v2064_v53 = vld [vmem:[%s2897_s0 + $0x168] sm:$0xff]  ;;  %v1004_v55 = vld [vmem:[%s2898_s3 + $0x38] sm:$0xff] }
  0x13   :  { %1560 = vmatpush3.msra.mxu0 %v1011_v38  ;;  %1702 = vmatpush3.msra.mxu1 %v1011_v38  ;;  %v2069_v54 = vld [vmem:[%s2897_s0 + $0x160] sm:$0xff]  ;;  %v1003_v56 = vld [vmem:[%s2898_s3 + $0x30] sm:$0xff]  ;;  %v1002_v58 = vld [vmem:[%s2898_s3 + $0x28] sm:$0xff] }
  0x14   :  { %1561 = vmatprep.subr.mxu0 %v1010_v41  ;;  %1687 = vmatprep.subr.mxu1 %v1010_v41  ;;  %v2082_v57 = vld [vmem:[%s2897_s0 + $0x170] sm:$0xff]  ;;  %v2093_v60 = vld [vmem:[%s2897_s0 + $0x178] sm:$0xff]  ;;  %v1001_v61 = vld [vmem:[%s2898_s3 + $0x20] sm:$0xff] }
  0x15   :  { %1562 = vmatpush3.msra.mxu0 %v1010_v41  ;;  %1703 = vmatpush3.msra.mxu1 %v1010_v41  ;;  %v1000_v62 = vld [vmem:[%s2898_s3 + $0x18] sm:$0xff]  ;;  %v2106_v63 = vld [vmem:[%s2897_s0 + $0x188] sm:$0xff]  ;;  %v997_v38 = vld [vmem:[%s2898_s3] sm:$0xff] }
  0x16   :  { %143 = vperm.xlu1 %1720, %v1836_v11   ;;  %138 = vperm.xlu0 %1719, %v1841_v12   ;;  %v998_v37 = vld [vmem:[%s2898_s3 + $0x8] sm:$0xff]  ;;  %v2136_v41 = vld [vmem:[%s2897_s0 + $0x1b8] sm:$0xff] }
  0x17   :  { %1563 = vmatprep.subr.mxu0 %v1009_v42  ;;  %1688 = vmatprep.subr.mxu1 %v1009_v42 }
  0x18   :  { %1564 = vmatpush3.msra.mxu0 %v1009_v42  ;;  %1704 = vmatpush3.msra.mxu1 %v1009_v42 }
  0x19   :  { %1565 = vmatprep.subr.mxu0 %v1008_v45  ;;  %1689 = vmatprep.subr.mxu1 %v1008_v45 }
  0x1a   :  { %153 = vperm.xlu1 %1720, %v1848_v13   ;;  %148 = vperm.xlu0 %1719, %v1853_v14  }
  0x1b   :  { %1566 = vmatpush3.msra.mxu0 %v1008_v45  ;;  %1705 = vmatpush3.msra.mxu1 %v1008_v45 }
  0x1c   :  { %1567 = vmatprep.subr.mxu0 %v1007_v48  ;;  %1690 = vmatprep.subr.mxu1 %v1007_v48 }
  0x1d   :  { %1568 = vmatpush3.msra.mxu0 %v1007_v48  ;;  %1706 = vmatpush3.msra.mxu1 %v1007_v48 }
  0x1e   :  { %163 = vperm.xlu1 %1720, %v1860_v15   ;;  %158 = vperm.xlu0 %1719, %v1865_v16  }
  0x1f   :  { %1569 = vmatprep.subr.mxu0 %v1006_v49  ;;  %1691 = vmatprep.subr.mxu1 %v1006_v49 }
  0x20   :  { %1570 = vmatpush3.msra.mxu0 %v1006_v49  ;;  %1707 = vmatpush3.msra.mxu1 %v1006_v49 }
  0x21   :  { %1571 = vmatprep.subr.mxu0 %v1005_v52  ;;  %1692 = vmatprep.subr.mxu1 %v1005_v52 }
  0x22   :  { %173 = vperm.xlu1 %1720, %v1872_v17   ;;  %168 = vperm.xlu0 %1719, %v1877_v18  }
  0x23   :  { %1572 = vmatpush3.msra.mxu0 %v1005_v52  ;;  %1708 = vmatpush3.msra.mxu1 %v1005_v52 }
  0x24   :  { %1573 = vmatprep.subr.mxu0 %v1004_v55  ;;  %1693 = vmatprep.subr.mxu1 %v1004_v55 }
  0x25   :  { %1574 = vmatpush3.msra.mxu0 %v1004_v55  ;;  %1709 = vmatpush3.msra.mxu1 %v1004_v55 }
  0x26   :  { %183 = vperm.xlu1 %1720, %v1884_v19   ;;  %178 = vperm.xlu0 %1719, %v1889_v20  }
  0x27   :  { %1575 = vmatprep.subr.mxu0 %v1003_v56  ;;  %1694 = vmatprep.subr.mxu1 %v1003_v56 }
  0x28   :  { %1576 = vmatpush3.msra.mxu0 %v1003_v56  ;;  %1710 = vmatpush3.msra.mxu1 %v1003_v56 }
  0x29   :  { %1577 = vmatprep.subr.mxu0 %v1002_v58  ;;  %1695 = vmatprep.subr.mxu1 %v1002_v58 }
  0x2a   :  { %193 = vperm.xlu1 %1720, %v1896_v21   ;;  %188 = vperm.xlu0 %1719, %v1901_v22  }
  0x2b   :  { %1578 = vmatpush3.msra.mxu0 %v1002_v58  ;;  %1711 = vmatpush3.msra.mxu1 %v1002_v58 }
  0x2c   :  { %1579 = vmatprep.subr.mxu0 %v1001_v61  ;;  %1696 = vmatprep.subr.mxu1 %v1001_v61 }
  0x2d   :  { %1580 = vmatpush3.msra.mxu0 %v1001_v61  ;;  %1712 = vmatpush3.msra.mxu1 %v1001_v61 }
  0x2e   :  { %203 = vperm.xlu1 %1720, %v1908_v23   ;;  %198 = vperm.xlu0 %1719, %v1913_v24  }
  0x2f   :  { %1581 = vmatprep.subr.mxu0 %v1000_v62  ;;  %1697 = vmatprep.subr.mxu1 %v1000_v62 }
  0x30   :  { %1582 = vmatpush3.msra.mxu0 %v1000_v62  ;;  %1713 = vmatpush3.msra.mxu1 %v1000_v62 }
  0x32   :  { %213 = vperm.xlu1 %1720, %v1920_v25   ;;  %208 = vperm.xlu0 %1719, %v1925_v26  }
  0x36   :  { %223 = vperm.xlu1 %1720, %v1932_v27   ;;  %218 = vperm.xlu0 %1719, %v1937_v28  }
  0x3a   :  { %233 = vperm.xlu1 %1720, %v1944_v29   ;;  %228 = vperm.xlu0 %1719, %v1949_v30  }
  0x3e   :  { %243 = vperm.xlu1 %1720, %v1956_v31   ;;  %238 = vperm.xlu0 %1719, %v1961_v32  }
  0x42   :  { %253 = vperm.xlu1 %1720, %v1968_v33   ;;  %248 = vperm.xlu0 %1719, %v1973_v34  }
  0x46   :  { %263 = vperm.xlu1 %1720, %v1980_v35   ;;  %258 = vperm.xlu0 %1719, %v1985_v36  }
  0x4a   :  { %273 = vperm.xlu1 %1720, %v1998_v39   ;;  %268 = vperm.xlu0 %1719, %v2003_v40  }
  0x4e   :  { %283 = vperm.xlu1 %1720, %v2016_v43   ;;  %278 = vperm.xlu0 %1719, %v2021_v44  }
  0x52   :  { %293 = vperm.xlu1 %1720, %v2031_v46   ;;  %288 = vperm.xlu0 %1719, %v2036_v47  }
  0x56   :  { %303 = vperm.xlu1 %1720, %v2049_v50   ;;  %298 = vperm.xlu0 %1719, %v2054_v51  }
  0x5a   :  { %313 = vperm.xlu1 %1720, %v2064_v53   ;;  %308 = vperm.xlu0 %1719, %v2069_v54  }
  0x5e   :  { %1721 = vset.pattern.permute.xlu1 %v2905_v59  ;;  %318 = vperm.xlu0 %1719, %v2082_v57  }
  0x5f   :  { %546 = vperm.xlu1 %1721, %v1781_v2   ;;  %v999_v2 = vld [vmem:[%s2898_s3 + $0x10] sm:$0xff] }
  0x60   :  { %1583 = vmatprep.subr.mxu0 %v999_v2  ;;  %1698 = vmatprep.subr.mxu1 %v999_v2 }
  0x61   :  { %1584 = vmatpush3.msra.mxu0 %v999_v2  ;;  %1714 = vmatpush3.msra.mxu1 %v999_v2 }
  0x62   :  { %323 = vperm.xlu0 %1719, %v2093_v60   ;;  %1585 = vmatprep.subr.mxu0 %v998_v37 }
  0x63   :  { %550 = vperm.xlu1 %1721, %v1793_v4   ;;  %v2119_v4 = vld [vmem:[%s2897_s0 + $0x198] sm:$0xff]  ;;  %1586 = vmatpush3.msra.mxu0 %v998_v37 }
  0x64   :  { %1587 = vmatprep.subr.mxu0 %v997_v38  ;;  %1699 = vmatprep.subr.mxu1 %v998_v37 }
  0x65   :  { %1588 = vmatpush3.msra.mxu0 %v997_v38  ;;  %1715 = vmatpush3.msra.mxu1 %v998_v37 }
  0x66   :  { %333 = vperm.xlu0 %1719, %v2106_v63   ;;  %1700 = vmatprep.subr.mxu1 %v997_v38 }
  0x67   :  { %678 = vperm.xlu1 %1721, %v1968_v33   ;;  %v2129_v33 = vld [vmem:[%s2897_s0 + $0x1a8] sm:$0xff]  ;;  %1716 = vmatpush3.msra.mxu1 %v997_v38 }
  0x6a   :  { %343 = vperm.xlu0 %1719, %v2119_v4  }
  0x6b   :  { %682 = vperm.xlu1 %1721, %v1985_v36   ;;  %v2143_v36 = vld [vmem:[%s2897_s0 + $0x1c8] sm:$0xff] }
  0x6e   :  { %353 = vperm.xlu0 %1719, %v2129_v33  }
  0x6f   :  { %686 = vperm.xlu1 %1721, %v1980_v35   ;;  %v2150_v35 = vld [vmem:[%s2897_s0 + $0x1d8] sm:$0xff] }
  0x72   :  { %363 = vperm.xlu0 %1719, %v2136_v41  }
  0x73   :  { %690 = vperm.xlu1 %1721, %v2003_v40   ;;  %v2157_v40 = vld [vmem:[%s2897_s0 + $0x1e8] sm:$0xff] }
  0x76   :  { %373 = vperm.xlu0 %1719, %v2143_v36  }
  0x77   :  { %694 = vperm.xlu1 %1721, %v1998_v39   ;;  %v2168_v39 = vld [vmem:[%s2897_s0 + $0x1f8] sm:$0xff] }
  0x78   :  { %2908 = vst [vmem:[#allocation2_spill] sm:$0xff] %v2168_v39 }
  0x7a   :  { %383 = vperm.xlu0 %1719, %v2150_v35  }
  0x7b   :  { %698 = vperm.xlu1 %1721, %v2021_v44  }
  0x7d   :  { %v2159_v42 = vpop.permute.xlu1 %98  ;;  %v2161_v45 = vpop.permute.xlu0 %88 }
  0x7e   :  { %393 = vperm.xlu0 %1719, %v2157_v40  }
  0x7f   :  { %702 = vperm.xlu1 %1721, %v2016_v43  }
  0x81   :  { %v2170_v48 = vpop.permute.xlu1 %103  ;;  %v2172_v44 = vpop.permute.xlu0 %93 }
  0x82   :  { %403 = vperm.xlu0 %1719, %v2168_v39  }
  0x83   :  { %706 = vperm.xlu1 %1721, %v2036_v47  }
  0x85   :  { %v2176_v49 = vpop.permute.xlu1 %113  ;;  %v2178_v52 = vpop.permute.xlu0 %108 }
  0x86   :  { %1737 = vset.pattern.permute.xlu0 %v2905_v59 }
  0x87   :  { %710 = vperm.xlu1 %1721, %v2031_v46   ;;  %674 = vperm.xlu0 %1737, %v1973_v34  }
  0x89   :  { %v2183_v43 = vpop.permute.xlu1 %123  ;;  %v2185_v55 = vpop.permute.xlu0 %118 }
  0x8b   :  { %714 = vperm.xlu1 %1721, %v2054_v51   ;;  %554 = vperm.xlu0 %1737, %v1776_v1  }
  0x8d   :  { %v2189_v56 = vpop.permute.xlu1 %133  ;;  %v2191_v47 = vpop.permute.xlu0 %128 }
  0x8f   :  { %718 = vperm.xlu1 %1721, %v2049_v50   ;;  %558 = vperm.xlu0 %1737, %v1788_v3  }
  0x91   :  { %v2195_v58 = vpop.permute.xlu1 %143  ;;  %v2197_v46 = vpop.permute.xlu0 %138 }
  0x93   :  { %722 = vperm.xlu1 %1721, %v2069_v54   ;;  %562 = vperm.xlu0 %1737, %v1805_v6  }
  0x95   :  { %v2201_v34 = vpop.permute.xlu1 %153  ;;  %v2203_v51 = vpop.permute.xlu0 %148 }
  0x97   :  { %726 = vperm.xlu1 %1721, %v2064_v53   ;;  %566 = vperm.xlu0 %1737, %v1800_v5  }
  0x99   :  { %v2207_v1 = vpop.permute.xlu1 %163  ;;  %v2209_v50 = vpop.permute.xlu0 %158 }
  0x9b   :  { %602 = vperm.xlu1 %1721, %v1865_v16   ;;  %570 = vperm.xlu0 %1737, %v1817_v8   ;;  %v68_v8 = vld [vmem:[%s2897_s0 + $0x180] sm:$0xff] }
  0x9d   :  { %v2213_v3 = vpop.permute.xlu1 %173  ;;  %v2215_v54 = vpop.permute.xlu0 %168 }
  0x9e   :  { %2909 = vst [vmem:[#allocation3_spill] sm:$0xff] %v2213_v3 }
  0x9f   :  { %730 = vperm.xlu1 %1721, %v2082_v57   ;;  %574 = vperm.xlu0 %1737, %v1812_v7  }
  0xa1   :  { %v2219_v6 = vpop.permute.xlu1 %183  ;;  %v2221_v53 = vpop.permute.xlu0 %178 }
  0xa2   :  { %2910 = vst [vmem:[#allocation4_spill] sm:$0xff] %v2219_v6  ;;  %2911 = vst [vmem:[#allocation5_spill] sm:$0xff] %v2221_v53 }
  0xa3   :  { %734 = vperm.xlu1 %1721, %v2093_v60   ;;  %578 = vperm.xlu0 %1737, %v1829_v10  }
  0xa5   :  { %v2225_v5 = vpop.permute.xlu1 %193  ;;  %v2227_v16 = vpop.permute.xlu0 %188 }
  0xa6   :  { %2912 = vst [vmem:[#allocation6_spill] sm:$0xff] %v2225_v5  ;;  %2913 = vst [vmem:[#allocation7_spill] sm:$0xff] %v2227_v16 }
  0xa7   :  { %1722 = vset.pattern.permute.xlu1 %v2903_v0  ;;  %582 = vperm.xlu0 %1737, %v1824_v9  }
  0xa8   :  { %328 = vperm.xlu1 %1722, %v68_v8  }
  0xa9   :  { %v2234_v7 = vpop.permute.xlu1 %203  ;;  %v2236_v57 = vpop.permute.xlu0 %198 }
  0xaa   :  { %2914 = vst [vmem:[#allocation8_spill] sm:$0xff] %v2234_v7  ;;  %2915 = vst [vmem:[#allocation9_spill] sm:$0xff] %v2236_v57  ;;  %v2925_v57 = vmov 1  }
  0xab   :  { %586 = vperm.xlu0 %1737, %v1841_v12  }
  0xac   :  { %1723 = vset.pattern.permute.xlu1 %v2905_v59 }
  0xad   :  { %v2240_v10 = vpop.permute.xlu1 %213  ;;  %610 = vperm.xlu1 %1723, %v1877_v18   ;;  %v2243_v60 = vpop.permute.xlu0 %208  ;;  %v70_v18 = vld [vmem:[%s2897_s0 + $0x190] sm:$0xff] }
  0xae   :  { %2916 = vst [vmem:[#allocation10_spill] sm:$0xff] %v2240_v10  ;;  %2917 = vst [vmem:[#allocation11_spill] sm:$0xff] %v2243_v60 }
  0xaf   :  { %590 = vperm.xlu0 %1737, %v1836_v11  }
  0xb1   :  { %v2246_v61 = vpop.permute.xlu1 %223  ;;  %738 = vperm.xlu1 %1723, %v68_v8   ;;  %v2248_v9 = vpop.permute.xlu0 %218 }
  0xb2   :  { %2918 = vst [vmem:[#allocation12_spill] sm:$0xff] %v2246_v61  ;;  %2919 = vst [vmem:[#allocation13_spill] sm:$0xff] %v2248_v9 }
  0xb3   :  { %594 = vperm.xlu0 %1737, %v1853_v14  }
  0xb5   :  { %v2251_v62 = vpop.permute.xlu1 %233  ;;  %742 = vperm.xlu1 %1723, %v2106_v63   ;;  %v2254_v12 = vpop.permute.xlu0 %228 }
  0xb6   :  { %2920 = vst [vmem:[#allocation14_spill] sm:$0xff] %v2251_v62  ;;  %2921 = vst [vmem:[#allocation15_spill] sm:$0xff] %v2254_v12  ;;  %v2924_v12 = vmov 0  }
  0xb7   :  { %598 = vperm.xlu0 %1737, %v1848_v13  }
  0xb9   :  { %v2260_v11 = vpop.permute.xlu1 %243  ;;  %1724 = vset.pattern.permute.xlu1 %v2903_v0  ;;  %v2263_v2 = vpop.permute.xlu0 %238 }
  0xba   :  { %2922 = vst [vmem:[#allocation16_spill] sm:$0xff] %v2260_v11  ;;  %2923 = vst [vmem:[#allocation17_spill] sm:$0xff] %v2263_v2  ;;  %338 = vperm.xlu1 %1724, %v70_v18   ;;  %v2312_v2 = vld [vmem:[%s2899_s1] ss:$0 sm:$0xff]  ;;  %v74_v11 = vld [vmem:[%s2897_s0 + $0x1b0] sm:$0xff] }
  0xbb   :  { %606 = vperm.xlu0 %1737, %v1860_v15   ;;  %v413_v39 = vmul.f32 %v2312_v2, %v2170_v48 }
  0xbd   :  { %v2266_v14 = vpop.permute.xlu1 %253  ;;  %v2268_v63 = vpop.permute.xlu0 %248 }
  0xbe   :  { %1725 = vset.pattern.permute.xlu1 %v2905_v59 }
  0xbf   :  { %618 = vperm.xlu1 %1725, %v1889_v20   ;;  %614 = vperm.xlu0 %1737, %v1872_v17   ;;  %v72_v17 = vld [vmem:[%s2897_s0 + $0x1a0] sm:$0xff] }
  0xc1   :  { %v2273_v13 = vpop.permute.xlu1 %263  ;;  %v2275_v37 = vpop.permute.xlu0 %258 }
  0xc3   :  { %746 = vperm.xlu1 %1725, %v70_v18   ;;  %622 = vperm.xlu0 %1737, %v1884_v19  }
  0xc5   :  { %v2278_v38 = vpop.permute.xlu1 %273  ;;  %v2280_v15 = vpop.permute.xlu0 %268 }
  0xc7   :  { %750 = vperm.xlu1 %1725, %v2119_v4   ;;  %630 = vperm.xlu0 %1737, %v1896_v21  }
  0xc9   :  { %v2284_v8 = vpop.permute.xlu1 %283  ;;  %v2286_v20 = vpop.permute.xlu0 %278 }
  0xcb   :  { %1726 = vset.pattern.permute.xlu1 %v2903_v0  ;;  %638 = vperm.xlu0 %1737, %v1908_v23  }
  0xcc   :  { %348 = vperm.xlu1 %1726, %v72_v17  }
  0xcd   :  { %v2293_v19 = vpop.permute.xlu1 %293  ;;  %v2295_v18 = vpop.permute.xlu0 %288 }
  0xcf   :  { %646 = vperm.xlu0 %1737, %v1920_v25   ;;  %v410_v25 = vmul.f32 %v2312_v2, %v2161_v45  ;;  %v411_v45 = vmul.f32 %v2312_v2, %v2172_v44 }
  0xd0   :  { %1727 = vset.pattern.permute.xlu1 %v2905_v59 }
  0xd1   :  { %v2299_v21 = vpop.permute.xlu1 %303  ;;  %626 = vperm.xlu1 %1727, %v1901_v22   ;;  %v2302_v4 = vpop.permute.xlu0 %298  ;;  %v2320_v22 = vld [vmem:[%s2899_s1 + $0x1] ss:$0 sm:$0xff] }
  0xd3   :  { %654 = vperm.xlu0 %1737, %v1932_v27  }
  0xd5   :  { %v2305_v0 = vpop.permute.xlu1 %313  ;;  %754 = vperm.xlu1 %1727, %v72_v17   ;;  %v2307_v23 = vpop.permute.xlu0 %308  ;;  %v2328_v17 = vld [vmem:[%s2900_s2] ss:$0 sm:$0xff] }
  0xd6   :  { %v481_v60 = vadd.f32 %v2328_v17, %v411_v45 }
  0xd7   :  { %662 = vperm.xlu0 %1737, %v1944_v29  }
  0xd9   :  { %758 = vperm.xlu1 %1727, %v2129_v33   ;;  %v2323_v27 = vpop.permute.xlu0 %318  ;;  %v480_v33 = vadd.f32 %v2328_v17, %v410_v25 }
  0xda   :  { %v547_v59 = vpop.permute.xlu1 %546 }
  0xdb   :  { %v805_v29 = vmul.f32 %v2320_v22, %v547_v59  ;;  %670 = vperm.xlu0 %1737, %v1956_v31  }
  0xdd   :  { %1728 = vset.pattern.permute.xlu1 %v2924_v12  ;;  %v2339_v62 = vpop.permute.xlu0 %323  ;;  %v869_v9 = vadd.f32 %v805_v29, %v480_v33 }
  0xde   :  { %358 = vperm.xlu1 %1728, %v74_v11   ;;  %v551_v61 = vpop.permute.xlu1 %550 }
  0xdf   :  { %v806_v44 = vmul.f32 %v2320_v22, %v551_v61  ;;  %v933_v59 = vmax.f32 %v869_v9, 0.0  ;;  %v76_v61 = vld [vmem:[%s2897_s0 + $0x1c0] sm:$0xff] }
  0xe1   :  { %v870_v10 = vadd.f32 %v806_v44, %v481_v60  ;;  %1589 = vmatprep.mubr.f32.mxu0 %v933_v59  ;;  %v2343_v31 = vpop.permute.xlu0 %333 }
  0xe2   :  { %1729 = vset.pattern.permute.xlu1 %v2925_v57  ;;  %v679_v7 = vpop.permute.xlu1 %678 }
  0xe3   :  { %v934_v25 = vmax.f32 %v870_v10, 0.0  ;;  %634 = vperm.xlu1 %1729, %v1913_v24  }
  0xe5   :  { %1590 = vmatmul.mubr.f32.vlgmr.msra.gmra.mxu0 %v934_v25  ;;  %v2347_v16 = vpop.permute.xlu0 %343 }
  0xe6   :  { %2926 = vst [vmem:[#allocation18_spill] sm:$0xff] %v2347_v16  ;;  %v683_v29 = vpop.permute.xlu1 %682 }
  0xe7   :  { %762 = vperm.xlu1 %1729, %v74_v11  }
  0xe9   :  { %v2349_v33 = vpop.permute.xlu0 %353 }
  0xea   :  { %2927 = vst [vmem:[#allocation19_spill] sm:$0xff] %v2349_v33  ;;  %v687_v45 = vpop.permute.xlu1 %686  ;;  %v442_v33 = vmul.f32 %v2312_v2, %v2268_v63  ;;  %v445_v63 = vmul.f32 %v2312_v2, %v2273_v13 }
  0xeb   :  { %766 = vperm.xlu1 %1729, %v2136_v41  }
  0xec   :  { %v512_v16 = vadd.f32 %v2328_v17, %v442_v33 }
  0xed   :  { %v2352_v60 = vpop.permute.xlu0 %363 }
  0xee   :  { %2928 = vst [vmem:[#allocation20_spill] sm:$0xff] %v2352_v60  ;;  %v691_v9 = vpop.permute.xlu1 %690  ;;  %v443_v60 = vmul.f32 %v2312_v2, %v2266_v14  ;;  %v412_v14 = vmul.f32 %v2312_v2, %v2159_v42  ;;  %v840_v42 = vmul.f32 %v2320_v22, %v687_v45 }
  0xef   :  { %1730 = vset.pattern.permute.xlu1 %v2924_v12  ;;  %v841_v53 = vmul.f32 %v2320_v22, %v691_v9 }
  0xf0   :  { %368 = vperm.xlu1 %1730, %v76_v61   ;;  %v482_v3 = vadd.f32 %v2328_v17, %v412_v14 }
  0xf1   :  { %v2358_v24 = vpop.permute.xlu0 %373 }
  0xf2   :  { %2929 = vst [vmem:[#allocation21_spill] sm:$0xff] %v2358_v24  ;;  %v695_v10 = vpop.permute.xlu1 %694 }
  0xf4   :  { %1731 = vset.pattern.permute.xlu1 %v2925_v57 }
  0xf5   :  { %642 = vperm.xlu1 %1731, %v1925_v26   ;;  %v2362_v11 = vpop.permute.xlu0 %383  ;;  %v444_v26 = vmul.f32 %v2312_v2, %v2275_v37 }
  0xf6   :  { %2930 = vst [vmem:[#allocation22_spill] sm:$0xff] %v2362_v11  ;;  %v699_v41 = vpop.permute.xlu1 %698 }
  0xf7   :  { %v514_v5 = vadd.f32 %v2328_v17, %v444_v26  ;;  %v515_v26 = vadd.f32 %v2328_v17, %v445_v63  ;;  %v843_v14 = vmul.f32 %v2320_v22, %v699_v41 }
  0xf9   :  { %770 = vperm.xlu1 %1731, %v76_v61   ;;  %v2364_v44 = vpop.permute.xlu0 %393  ;;  %v78_v61 = vld [vmem:[%s2897_s0 + $0x1d0] sm:$0xff] }
  0xfa   :  { %2931 = vst [vmem:[#allocation23_spill] sm:$0xff] %v2364_v44  ;;  %v703_v59 = vpop.permute.xlu1 %702  ;;  %v838_v44 = vmul.f32 %v2320_v22, %v679_v7  ;;  %v446_v7 = vmul.f32 %v2312_v2, %v2280_v15  ;;  %v447_v15 = vmul.f32 %v2312_v2, %v2278_v38 }
  0xfc   :  { %v516_v45 = vadd.f32 %v2328_v17, %v446_v7  ;;  %v483_v7 = vadd.f32 %v2328_v17, %v413_v39 }
  0xfd   :  { %774 = vperm.xlu1 %1731, %v2143_v36   ;;  %v2367_v25 = vpop.permute.xlu0 %403  ;;  %v839_v36 = vmul.f32 %v2320_v22, %v683_v29 }
  0xfe   :  { %2932 = vst [vmem:[#allocation24_spill] sm:$0xff] %v2367_v25  ;;  %v707_v24 = vpop.permute.xlu1 %706  ;;  %v513_v25 = vadd.f32 %v2328_v17, %v443_v60  ;;  %v905_v38 = vadd.f32 %v841_v53, %v516_v45  ;;  %v450_v53 = vmul.f32 %v2312_v2, %v2295_v18 }
  0xff   :  { %v903_v60 = vadd.f32 %v839_v36, %v514_v5  ;;  %v448_v5 = vmul.f32 %v2312_v2, %v2286_v20  ;;  %v414_v20 = vmul.f32 %v2312_v2, %v2178_v52 }
 0x100   :  { %v902_v6 = vadd.f32 %v838_v44, %v513_v25  ;;  %v904_v44 = vadd.f32 %v840_v42, %v515_v26  ;;  %v842_v25 = vmul.f32 %v2320_v22, %v695_v10 }
 0x101   :  { %1732 = vset.pattern.permute.xlu1 %v2924_v12  ;;  %v967_v36 = vmax.f32 %v903_v60, 0.0  ;;  %v518_v10 = vadd.f32 %v2328_v17, %v448_v5  ;;  %v844_v60 = vmul.f32 %v2320_v22, %v703_v59  ;;  %v484_v18 = vadd.f32 %v2328_v17, %v414_v20 }
 0x102   :  { %378 = vperm.xlu1 %1732, %v78_v61   ;;  %v2386_v37 = vpop.permute.xlu1 %710  ;;  %v675_v11 = vpop.permute.xlu0 %674  ;;  %v966_v48 = vmax.f32 %v902_v6, 0.0  ;;  %v968_v39 = vmax.f32 %v904_v44, 0.0  ;;  %v520_v59 = vadd.f32 %v2328_v17, %v450_v53 }
 0x103   :  { %v837_v29 = vmul.f32 %v2320_v22, %v675_v11  ;;  %v907_v26 = vadd.f32 %v843_v14, %v518_v10 }
 0x105   :  { %v901_v13 = vadd.f32 %v837_v29, %v512_v16  ;;  %v517_v29 = vadd.f32 %v2328_v17, %v447_v15 }
 0x106   :  { %1733 = vset.pattern.permute.xlu1 %v2925_v57  ;;  %v715_v33 = vpop.permute.xlu1 %714  ;;  %v555_v11 = vpop.permute.xlu0 %554 }
 0x107   :  { %v807_v16 = vmul.f32 %v2320_v22, %v555_v11  ;;  %650 = vperm.xlu1 %1733, %v1937_v28   ;;  %v965_v9 = vmax.f32 %v901_v13, 0.0  ;;  %v449_v28 = vmul.f32 %v2312_v2, %v2284_v8  ;;  %v906_v52 = vadd.f32 %v842_v25, %v517_v29 }
 0x108   :  { %v969_v13 = vmax.f32 %v905_v38, 0.0  ;;  %v845_v8 = vmul.f32 %v2320_v22, %v707_v24  ;;  %v415_v11 = vmul.f32 %v2312_v2, %v2176_v49  ;;  %v452_v24 = vmul.f32 %v2312_v2, %v2302_v4  ;;  %v80_v4 = vld [vmem:[%s2897_s0 + $0x1e0] sm:$0xff] }
 0x109   :  { %v871_v63 = vadd.f32 %v807_v16, %v482_v3  ;;  %1637 = vmatprep.mubr.f32.mxu1 %v965_v9  ;;  %v519_v45 = vadd.f32 %v2328_v17, %v449_v28  ;;  %v970_v49 = vmax.f32 %v906_v52, 0.0  ;;  %v846_v25 = vmul.f32 %v2320_v22, %v2386_v37 }
 0x10a   :  { %v719_v6 = vpop.permute.xlu1 %718  ;;  %1638 = vmatmul.mubr.f32.vlgmr.msra.gmra.mxu1 %v966_v48  ;;  %v559_v42 = vpop.permute.xlu0 %558  ;;  %v847_v38 = vmul.f32 %v2320_v22, %v715_v33  ;;  %v453_v37 = vmul.f32 %v2312_v2, %v2299_v21  ;;  %v522_v33 = vadd.f32 %v2328_v17, %v452_v24  ;;  %v454_v28 = vmul.f32 %v2312_v2, %v2307_v23 }
 0x10b   :  { %v935_v3 = vmax.f32 %v871_v63, 0.0  ;;  %v808_v41 = vmul.f32 %v2320_v22, %v559_v42  ;;  %778 = vperm.xlu1 %1733, %v78_v61   ;;  %1640 = vmatprep.mubr.f32.mxu1 %v967_v36  ;;  %v451_v61 = vmul.f32 %v2312_v2, %v2293_v19  ;;  %v908_v44 = vadd.f32 %v844_v60, %v519_v45 }
 0x10c   :  { %v971_v19 = vmax.f32 %v907_v26, 0.0  ;;  %v909_v36 = vadd.f32 %v845_v8, %v520_v59  ;;  %v485_v63 = vadd.f32 %v2328_v17, %v415_v11  ;;  %v417_v23 = vmul.f32 %v2312_v2, %v2183_v43 }
 0x10d   :  { %v872_v15 = vadd.f32 %v808_v41, %v483_v7  ;;  %1592 = vmatprep.mubr.f32.mxu0 %v935_v3  ;;  %v521_v7 = vadd.f32 %v2328_v17, %v451_v61  ;;  %v848_v3 = vmul.f32 %v2320_v22, %v719_v6  ;;  %v911_v41 = vadd.f32 %v847_v38, %v522_v33 }
 0x10e   :  { %v723_v5 = vpop.permute.xlu1 %722  ;;  %1641 = vmatmul.mubr.f32.gmra.mxu1 %v968_v39  ;;  %v563_v16 = vpop.permute.xlu0 %562  ;;  %v973_v21 = vmax.f32 %v909_v36, 0.0  ;;  %v523_v60 = vadd.f32 %v2328_v17, %v453_v37  ;;  %v456_v26 = vmul.f32 %v2312_v2, %v2323_v27  ;;  %v524_v11 = vadd.f32 %v2328_v17, %v454_v28 }
 0x10f   :  { %v936_v9 = vmax.f32 %v872_v15, 0.0  ;;  %v809_v48 = vmul.f32 %v2320_v22, %v563_v16  ;;  %782 = vperm.xlu1 %1733, %v2150_v35   ;;  %1643 = vmatprep.mubr.f32.mxu1 %v969_v13  ;;  %v416_v35 = vmul.f32 %v2312_v2, %v2185_v55  ;;  %v972_v55 = vmax.f32 %v908_v44, 0.0 }
 0x110   :  { %v910_v53 = vadd.f32 %v846_v25, %v521_v7  ;;  %v849_v39 = vmul.f32 %v2320_v22, %v723_v5  ;;  %v455_v13 = vmul.f32 %v2312_v2, %v2305_v0  ;;  %v912_v61 = vadd.f32 %v848_v3, %v523_v60  ;;  %v82_v60 = vld [vmem:[%s2897_s0 + $0x1f0] sm:$0xff] }
 0x111   :  { %v873_v14 = vadd.f32 %v809_v48, %v484_v18  ;;  %1593 = vmatmul.mubr.f32.gmra.mxu0 %v936_v9  ;;  %v486_v15 = vadd.f32 %v2328_v17, %v416_v35  ;;  %v975_v0 = vmax.f32 %v911_v41, 0.0  ;;  %v487_v59 = vadd.f32 %v2328_v17, %v417_v23 }
 0x112   :  { %v727_v20 = vpop.permute.xlu1 %726  ;;  %1644 = vmatmul.mubr.f32.gmra.mxu1 %v970_v49  ;;  %v567_v29 = vpop.permute.xlu0 %566  ;;  %v974_v43 = vmax.f32 %v910_v53, 0.0  ;;  %v913_v27 = vadd.f32 %v849_v39, %v524_v11  ;;  %v418_v24 = vmul.f32 %v2312_v2, %v2191_v47  ;;  %v525_v9 = vadd.f32 %v2328_v17, %v455_v13 }
 0x113   :  { %v937_v42 = vmax.f32 %v873_v14, 0.0  ;;  %v810_v10 = vmul.f32 %v2320_v22, %v567_v29  ;;  %1734 = vset.pattern.permute.xlu1 %v2924_v12  ;;  %1646 = vmatprep.mubr.f32.mxu1 %v971_v19  ;;  %v850_v5 = vmul.f32 %v2320_v22, %v727_v20  ;;  %v526_v48 = vadd.f32 %v2328_v17, %v456_v26 }
 0x114   :  { %388 = vperm.xlu1 %1734, %v80_v4   ;;  %v457_v25 = vmul.f32 %v2312_v2, %v2339_v62  ;;  %v976_v38 = vmax.f32 %v912_v61, 0.0  ;;  %v419_v7 = vmul.f32 %v2312_v2, %v2189_v56  ;;  %v488_v37 = vadd.f32 %v2328_v17, %v418_v24 }
 0x115   :  { %v874_v52 = vadd.f32 %v810_v10, %v485_v63  ;;  %1595 = vmatprep.mubr.f32.mxu0 %v937_v42  ;;  %v914_v14 = vadd.f32 %v850_v5, %v525_v9  ;;  %v977_v63 = vmax.f32 %v913_v27, 0.0  ;;  %v422_v61 = vmul.f32 %v2312_v2, %v2203_v51 }
 0x116   :  { %v2458_v8 = vpop.permute.xlu1 %602  ;;  %1647 = vmatmul.mubr.f32.gmra.mxu1 %v972_v55  ;;  %v571_v6 = vpop.permute.xlu0 %570  ;;  %v527_v29 = vadd.f32 %v2328_v17, %v457_v25  ;;  %v489_v56 = vadd.f32 %v2328_v17, %v419_v7  ;;  %v459_v27 = vmul.f32 %v2312_v2, %v2343_v31  ;;  %v423_v24 = vmul.f32 %v2312_v2, %v2201_v34 }
 0x117   :  { %v938_v18 = vmax.f32 %v874_v52, 0.0  ;;  %v811_v45 = vmul.f32 %v2320_v22, %v571_v6  ;;  %1649 = vmatprep.mubr.f32.mxu1 %v973_v21  ;;  %v978_v10 = vmax.f32 %v914_v14, 0.0  ;;  %v420_v21 = vmul.f32 %v2312_v2, %v2197_v46 }
 0x118   :  { %1735 = vset.pattern.permute.xlu1 %v2925_v57  ;;  %v421_v46 = vmul.f32 %v2312_v2, %v2195_v58  ;;  %v424_v51 = vmul.f32 %v2312_v2, %v2209_v50  ;;  %v819_v31 = vmul.f32 %v2320_v22, %v2458_v8  ;;  %v493_v50 = vadd.f32 %v2328_v17, %v423_v24 }
 0x119   :  { %v875_v16 = vadd.f32 %v811_v45, %v486_v15  ;;  %658 = vperm.xlu1 %1735, %v1949_v30   ;;  %1596 = vmatmul.mubr.f32.gmra.mxu0 %v938_v18  ;;  %v490_v26 = vadd.f32 %v2328_v17, %v420_v21  ;;  %v426_v14 = vmul.f32 %v2312_v2, %v2215_v54 }
 0x11a   :  { %v731_v49 = vpop.permute.xlu1 %730  ;;  %1650 = vmatmul.mubr.f32.gmra.mxu1 %v974_v43  ;;  %v575_v44 = vpop.permute.xlu0 %574  ;;  %v491_v43 = vadd.f32 %v2328_v17, %v421_v46 }
 0x11b   :  { %v939_v19 = vmax.f32 %v875_v16, 0.0  ;;  %v851_v36 = vmul.f32 %v2320_v22, %v731_v49  ;;  %v812_v30 = vmul.f32 %v2320_v22, %v575_v44  ;;  %1652 = vmatprep.mubr.f32.mxu1 %v975_v0 }
 0x11d   :  { %v915_v47 = vadd.f32 %v851_v36, %v526_v48  ;;  %v876_v35 = vadd.f32 %v812_v30, %v487_v59  ;;  %786 = vperm.xlu1 %1735, %v80_v4   ;;  %1598 = vmatprep.mubr.f32.mxu0 %v939_v19  ;;  %v492_v48 = vadd.f32 %v2328_v17, %v422_v61  ;;  %v2937_v61 = vld [vmem:[#allocation18_spill] sm:$0xff] }
 0x11e   :  { %v735_v20 = vpop.permute.xlu1 %734  ;;  %1653 = vmatmul.mubr.f32.gmra.mxu1 %v976_v38  ;;  %v579_v62 = vpop.permute.xlu0 %578  ;;  %v529_v19 = vadd.f32 %v2328_v17, %v459_v27  ;;  %v494_v38 = vadd.f32 %v2328_v17, %v424_v51 }
 0x11f   :  { %v940_v33 = vmax.f32 %v876_v35, 0.0  ;;  %v852_v28 = vmul.f32 %v2320_v22, %v735_v20  ;;  %v813_v42 = vmul.f32 %v2320_v22, %v579_v62  ;;  %1655 = vmatprep.mubr.f32.mxu1 %v977_v63  ;;  %v979_v55 = vmax.f32 %v915_v47, 0.0 }
 0x120   :  { %v425_v47 = vmul.f32 %v2312_v2, %v2207_v1  ;;  %v883_v20 = vadd.f32 %v819_v31, %v494_v38  ;;  %v2939_v38 = vld [vmem:[#allocation7_spill] sm:$0xff] }
 0x121   :  { %v916_v4 = vadd.f32 %v852_v28, %v527_v29  ;;  %v877_v53 = vadd.f32 %v813_v42, %v488_v37  ;;  %790 = vperm.xlu1 %1735, %v2157_v40   ;;  %1599 = vmatmul.mubr.f32.gmra.mxu0 %v940_v33  ;;  %v2933_v37 = vld [vmem:[#allocation2_spill] sm:$0xff]  ;;  %v2934_v42 = vld [vmem:[#allocation3_spill] sm:$0xff] }
 0x122   :  { %1656 = vmatmul.mubr.f32.gmra.mxu1 %v978_v10  ;;  %v583_v3 = vpop.permute.xlu0 %582  ;;  %v427_v54 = vmul.f32 %v2312_v2, %v2934_v42  ;;  %v496_v10 = vadd.f32 %v2328_v17, %v426_v14  ;;  %v947_v21 = vmax.f32 %v883_v20, 0.0  ;;  %v430_v14 = vmul.f32 %v2312_v2, %v2939_v38 }
 0x123   :  { %v980_v41 = vmax.f32 %v916_v4, 0.0  ;;  %v941_v39 = vmax.f32 %v877_v53, 0.0  ;;  %v814_v52 = vmul.f32 %v2320_v22, %v583_v3  ;;  %v329_v23 = vpop.permute.xlu1 %328  ;;  %1658 = vmatprep.mubr.f32.mxu1 %v979_v55  ;;  %v495_v55 = vadd.f32 %v2328_v17, %v425_v47  ;;  %v2935_v4 = vld [vmem:[#allocation5_spill] sm:$0xff] }
 0x124   :  { %v458_v18 = vmul.f32 %v2312_v2, %v329_v23  ;;  %v428_v53 = vmul.f32 %v2312_v2, %v2935_v4  ;;  %v2936_v23 = vld [vmem:[#allocation4_spill] sm:$0xff] }
 0x125   :  { %v878_v13 = vadd.f32 %v814_v52, %v489_v56  ;;  %1736 = vset.pattern.permute.xlu1 %v2924_v12  ;;  %1601 = vmatprep.mubr.f32.mxu0 %v941_v39  ;;  %v497_v52 = vadd.f32 %v2328_v17, %v427_v54 }
 0x126   :  { %398 = vperm.xlu1 %1736, %v82_v60   ;;  %1659 = vmatmul.mubr.f32.gmra.mxu1 %v980_v41  ;;  %v587_v40 = vpop.permute.xlu0 %586  ;;  %v528_v16 = vadd.f32 %v2328_v17, %v458_v18 }
 0x127   :  { %v942_v6 = vmax.f32 %v878_v13, 0.0  ;;  %v815_v15 = vmul.f32 %v2320_v22, %v587_v40 }
 0x128   :  { %v611_v11 = vpop.permute.xlu1 %610 }
 0x129   :  { %v879_v45 = vadd.f32 %v815_v15, %v490_v26  ;;  %1602 = vmatmul.mubr.f32.gmra.mxu0 %v942_v6  ;;  %v821_v62 = vmul.f32 %v2320_v22, %v611_v11  ;;  %v498_v26 = vadd.f32 %v2328_v17, %v428_v53 }
 0x12a   :  { %1738 = vset.pattern.permute.xlu1 %v2925_v57  ;;  %v591_v12 = vpop.permute.xlu0 %590 }
 0x12b   :  { %v943_v5 = vmax.f32 %v879_v45, 0.0  ;;  %v816_v58 = vmul.f32 %v2320_v22, %v591_v12  ;;  %666 = vperm.xlu1 %1738, %v1961_v32   ;;  %v885_v41 = vadd.f32 %v821_v62, %v496_v10 }
 0x12c   :  { %v739_v0 = vpop.permute.xlu1 %738 }
 0x12d   :  { %v880_v59 = vadd.f32 %v816_v58, %v491_v43  ;;  %v853_v57 = vmul.f32 %v2320_v22, %v739_v0  ;;  %1604 = vmatprep.mubr.f32.mxu0 %v943_v5  ;;  %v949_v18 = vmax.f32 %v885_v41, 0.0  ;;  %v461_v5 = vmul.f32 %v2312_v2, %v2937_v61  ;;  %v2943_v61 = vld [vmem:[#allocation20_spill] sm:$0xff] }
 0x12e   :  { %v595_v9 = vpop.permute.xlu0 %594 }
 0x12f   :  { %v944_v32 = vmax.f32 %v880_v59, 0.0  ;;  %v917_v49 = vadd.f32 %v853_v57, %v528_v16  ;;  %v817_v44 = vmul.f32 %v2320_v22, %v595_v9  ;;  %794 = vperm.xlu1 %1738, %v82_v60   ;;  %v429_v60 = vmul.f32 %v2312_v2, %v2936_v23  ;;  %v2941_v23 = vld [vmem:[#allocation8_spill] sm:$0xff] }
 0x130   :  { %v743_v25 = vpop.permute.xlu1 %742 }
 0x131   :  { %v981_v36 = vmax.f32 %v917_v49, 0.0  ;;  %v881_v30 = vadd.f32 %v817_v44, %v492_v48  ;;  %v854_v34 = vmul.f32 %v2320_v22, %v743_v25  ;;  %1605 = vmatmul.mubr.f32.gmra.mxu0 %v944_v32  ;;  %v499_v43 = vadd.f32 %v2328_v17, %v429_v60 }
 0x132   :  { %v599_v63 = vpop.permute.xlu0 %598  ;;  %v531_v32 = vadd.f32 %v2328_v17, %v461_v5  ;;  %v433_v60 = vmul.f32 %v2312_v2, %v2941_v23  ;;  %v465_v5 = vmul.f32 %v2312_v2, %v2943_v61 }
 0x133   :  { %v945_v8 = vmax.f32 %v881_v30, 0.0  ;;  %v918_v35 = vadd.f32 %v854_v34, %v529_v19  ;;  %v818_v7 = vmul.f32 %v2320_v22, %v599_v63  ;;  %798 = vperm.xlu1 %1738, %v2933_v37   ;;  %1661 = vmatprep.mubr.f32.mxu1 %v981_v36  ;;  %v2938_v34 = vld [vmem:[#allocation6_spill] sm:$0xff] }
 0x135   :  { %v982_v29 = vmax.f32 %v918_v35, 0.0  ;;  %v882_v33 = vadd.f32 %v818_v7, %v493_v50  ;;  %v339_v28 = vpop.permute.xlu1 %338  ;;  %1607 = vmatprep.mubr.f32.mxu0 %v945_v8  ;;  %v431_v50 = vmul.f32 %v2312_v2, %v2938_v34  ;;  %v500_v35 = vadd.f32 %v2328_v17, %v430_v14 }
 0x136   :  { %v607_v1 = vpop.permute.xlu0 %606  ;;  %v460_v13 = vmul.f32 %v2312_v2, %v339_v28 }
 0x137   :  { %v946_v56 = vmax.f32 %v882_v33, 0.0  ;;  %v820_v3 = vmul.f32 %v2320_v22, %v607_v1  ;;  %1662 = vmatmul.mubr.f32.gmra.mxu1 %v982_v29  ;;  %v501_v47 = vadd.f32 %v2328_v17, %v431_v50  ;;  %v2940_v33 = vld [vmem:[#allocation19_spill] sm:$0xff] }
 0x138   :  { %v530_v58 = vadd.f32 %v2328_v17, %v460_v13  ;;  %v463_v28 = vmul.f32 %v2312_v2, %v2940_v33  ;;  %v2942_v13 = vld [vmem:[#allocation9_spill] sm:$0xff] }
 0x139   :  { %v884_v39 = vadd.f32 %v820_v3, %v495_v55  ;;  %1608 = vmatmul.mubr.f32.gmra.mxu0 %v946_v56 }
 0x13a   :  { %v619_v40 = vpop.permute.xlu1 %618  ;;  %1610 = vmatprep.mubr.f32.mxu0 %v947_v21  ;;  %v615_v46 = vpop.permute.xlu0 %614  ;;  %v533_v53 = vadd.f32 %v2328_v17, %v463_v28 }
 0x13b   :  { %v948_v6 = vmax.f32 %v884_v39, 0.0  ;;  %v823_v15 = vmul.f32 %v2320_v22, %v619_v40  ;;  %v822_v11 = vmul.f32 %v2320_v22, %v615_v46  ;;  %v432_v40 = vmul.f32 %v2312_v2, %v2942_v13 }
 0x13d   :  { %v887_v45 = vadd.f32 %v823_v15, %v498_v26  ;;  %v886_v12 = vadd.f32 %v822_v11, %v497_v52  ;;  %1611 = vmatmul.mubr.f32.gmra.mxu0 %v948_v6  ;;  %v503_v26 = vadd.f32 %v2328_v17, %v433_v60  ;;  %v502_v15 = vadd.f32 %v2328_v17, %v432_v40 }
 0x13e   :  { %v747_v0 = vpop.permute.xlu1 %746  ;;  %1613 = vmatprep.mubr.f32.mxu0 %v949_v18  ;;  %v623_v27 = vpop.permute.xlu0 %622 }
 0x13f   :  { %v951_v16 = vmax.f32 %v887_v45, 0.0  ;;  %v950_v59 = vmax.f32 %v886_v12, 0.0  ;;  %v855_v57 = vmul.f32 %v2320_v22, %v747_v0  ;;  %v824_v24 = vmul.f32 %v2320_v22, %v623_v27 }
 0x141   :  { %v919_v51 = vadd.f32 %v855_v57, %v530_v58  ;;  %v888_v9 = vadd.f32 %v824_v24, %v499_v43  ;;  %1614 = vmatmul.mubr.f32.gmra.mxu0 %v950_v59  ;;  %v535_v24 = vadd.f32 %v2328_v17, %v465_v5 }
 0x142   :  { %v751_v48 = vpop.permute.xlu1 %750  ;;  %1616 = vmatprep.mubr.f32.mxu0 %v951_v16  ;;  %v631_v36 = vpop.permute.xlu0 %630 }
 0x143   :  { %v983_v49 = vmax.f32 %v919_v51, 0.0  ;;  %v952_v44 = vmax.f32 %v888_v9, 0.0  ;;  %v856_v31 = vmul.f32 %v2320_v22, %v751_v48  ;;  %v826_v63 = vmul.f32 %v2320_v22, %v631_v36 }
 0x145   :  { %v920_v25 = vadd.f32 %v856_v31, %v531_v32  ;;  %1617 = vmatmul.mubr.f32.gmra.mxu0 %v952_v44  ;;  %1664 = vmatprep.mubr.f32.mxu1 %v983_v49  ;;  %v890_v20 = vadd.f32 %v826_v63, %v501_v47  ;;  %v2944_v31 = vld [vmem:[#allocation10_spill] sm:$0xff] }
 0x146   :  { %v639_v41 = vpop.permute.xlu0 %638 }
 0x147   :  { %v984_v19 = vmax.f32 %v920_v25, 0.0  ;;  %v349_v30 = vpop.permute.xlu1 %348  ;;  %v954_v1 = vmax.f32 %v890_v20, 0.0  ;;  %v828_v46 = vmul.f32 %v2320_v22, %v639_v41  ;;  %v435_v25 = vmul.f32 %v2312_v2, %v2944_v31  ;;  %v2948_v41 = vld [vmem:[#allocation13_spill] sm:$0xff] }
 0x148   :  { %v462_v7 = vmul.f32 %v2312_v2, %v349_v30 }
 0x149   :  { %1665 = vmatmul.mubr.f32.gmra.mxu1 %v984_v19  ;;  %v892_v45 = vadd.f32 %v828_v46, %v503_v26  ;;  %v2945_v19 = vld [vmem:[#allocation11_spill] sm:$0xff]  ;;  %v505_v34 = vadd.f32 %v2328_v17, %v435_v25 }
 0x14a   :  { %v532_v42 = vadd.f32 %v2328_v17, %v462_v7  ;;  %v647_v32 = vpop.permute.xlu0 %646  ;;  %v434_v36 = vmul.f32 %v2312_v2, %v2945_v19  ;;  %v2946_v7 = vld [vmem:[#allocation21_spill] sm:$0xff] }
 0x14b   :  { %v956_v16 = vmax.f32 %v892_v45, 0.0  ;;  %v830_v30 = vmul.f32 %v2320_v22, %v647_v32  ;;  %v2951_v32 = vld [vmem:[#allocation15_spill] sm:$0xff] }
 0x14c   :  { %v627_v8 = vpop.permute.xlu1 %626  ;;  %v504_v38 = vadd.f32 %v2328_v17, %v434_v36 }
 0x14d   :  { %v825_v37 = vmul.f32 %v2320_v22, %v627_v8  ;;  %v894_v47 = vadd.f32 %v830_v30, %v505_v34 }
 0x14f   :  { %v889_v62 = vadd.f32 %v825_v37, %v500_v35  ;;  %v467_v37 = vmul.f32 %v2312_v2, %v2946_v7  ;;  %v958_v33 = vmax.f32 %v894_v47, 0.0 }
 0x150   :  { %v755_v29 = vpop.permute.xlu1 %754 }
 0x151   :  { %v953_v54 = vmax.f32 %v889_v62, 0.0  ;;  %v857_v10 = vmul.f32 %v2320_v22, %v755_v29 }
 0x153   :  { %v921_v55 = vadd.f32 %v857_v10, %v532_v42  ;;  %1619 = vmatprep.mubr.f32.mxu0 %v953_v54  ;;  %v537_v54 = vadd.f32 %v2328_v17, %v467_v37 }
 0x154   :  { %v759_v4 = vpop.permute.xlu1 %758  ;;  %1620 = vmatmul.mubr.f32.gmra.mxu0 %v954_v1 }
 0x155   :  { %v985_v56 = vmax.f32 %v921_v55, 0.0  ;;  %v858_v3 = vmul.f32 %v2320_v22, %v759_v4  ;;  %v655_v4 = vpop.permute.xlu0 %654 }
 0x157   :  { %v922_v21 = vadd.f32 %v858_v3, %v533_v53  ;;  %1667 = vmatprep.mubr.f32.mxu1 %v985_v56  ;;  %v2947_v3 = vld [vmem:[#allocation12_spill] sm:$0xff] }
 0x159   :  { %v986_v39 = vmax.f32 %v922_v21, 0.0  ;;  %v359_v52 = vpop.permute.xlu1 %358  ;;  %v437_v21 = vmul.f32 %v2312_v2, %v2947_v3 }
 0x15a   :  { %v464_v11 = vmul.f32 %v2312_v2, %v359_v52  ;;  %v832_v52 = vmul.f32 %v2320_v22, %v655_v4  ;;  %v2954_v4 = vld [vmem:[#allocation17_spill] sm:$0xff] }
 0x15b   :  { %1668 = vmatmul.mubr.f32.gmra.mxu1 %v986_v39  ;;  %v436_v39 = vmul.f32 %v2312_v2, %v2948_v41  ;;  %v507_v23 = vadd.f32 %v2328_v17, %v437_v21 }
 0x15c   :  { %v534_v58 = vadd.f32 %v2328_v17, %v464_v11  ;;  %v2949_v11 = vld [vmem:[#allocation22_spill] sm:$0xff] }
 0x15d   :  { %v506_v13 = vadd.f32 %v2328_v17, %v436_v39  ;;  %v896_v26 = vadd.f32 %v832_v52, %v507_v23 }
 0x15e   :  { %v635_v6 = vpop.permute.xlu1 %634 }
 0x15f   :  { %v827_v18 = vmul.f32 %v2320_v22, %v635_v6  ;;  %v960_v61 = vmax.f32 %v896_v26, 0.0 }
 0x161   :  { %v891_v12 = vadd.f32 %v827_v18, %v502_v15  ;;  %v469_v18 = vmul.f32 %v2312_v2, %v2949_v11  ;;  %v2955_v11 = vld [vmem:[#allocation24_spill] sm:$0xff] }
 0x162   :  { %v763_v43 = vpop.permute.xlu1 %762 }
 0x163   :  { %v955_v0 = vmax.f32 %v891_v12, 0.0  ;;  %v859_v27 = vmul.f32 %v2320_v22, %v763_v43 }
 0x165   :  { %v923_v59 = vadd.f32 %v859_v27, %v534_v58  ;;  %1622 = vmatprep.mubr.f32.mxu0 %v955_v0  ;;  %v539_v0 = vadd.f32 %v2328_v17, %v469_v18  ;;  %v473_v18 = vmul.f32 %v2312_v2, %v2955_v11 }
 0x166   :  { %v767_v57 = vpop.permute.xlu1 %766  ;;  %1623 = vmatmul.mubr.f32.gmra.mxu0 %v956_v16 }
 0x167   :  { %v987_v51 = vmax.f32 %v923_v59, 0.0  ;;  %v860_v9 = vmul.f32 %v2320_v22, %v767_v57  ;;  %v663_v57 = vpop.permute.xlu0 %662 }
 0x169   :  { %v924_v48 = vadd.f32 %v860_v9, %v535_v24  ;;  %1670 = vmatprep.mubr.f32.mxu1 %v987_v51  ;;  %v2950_v9 = vld [vmem:[#allocation14_spill] sm:$0xff] }
 0x16b   :  { %v988_v49 = vmax.f32 %v924_v48, 0.0  ;;  %v369_v44 = vpop.permute.xlu1 %368  ;;  %v439_v48 = vmul.f32 %v2312_v2, %v2950_v9 }
 0x16c   :  { %v466_v14 = vmul.f32 %v2312_v2, %v369_v44  ;;  %v834_v44 = vmul.f32 %v2320_v22, %v663_v57 }
 0x16d   :  { %1671 = vmatmul.mubr.f32.gmra.mxu1 %v988_v49  ;;  %v438_v49 = vmul.f32 %v2312_v2, %v2951_v32  ;;  %v509_v31 = vadd.f32 %v2328_v17, %v439_v48 }
 0x16e   :  { %v536_v20 = vadd.f32 %v2328_v17, %v466_v14  ;;  %v2952_v14 = vld [vmem:[#allocation23_spill] sm:$0xff] }
 0x16f   :  { %v508_v19 = vadd.f32 %v2328_v17, %v438_v49  ;;  %v898_v34 = vadd.f32 %v834_v44, %v509_v31 }
 0x170   :  { %v643_v50 = vpop.permute.xlu1 %642 }
 0x171   :  { %v829_v63 = vmul.f32 %v2320_v22, %v643_v50  ;;  %v962_v7 = vmax.f32 %v898_v34, 0.0 }
 0x173   :  { %v893_v8 = vadd.f32 %v829_v63, %v504_v38  ;;  %v471_v63 = vmul.f32 %v2312_v2, %v2952_v14 }
 0x174   :  { %v771_v35 = vpop.permute.xlu1 %770 }
 0x175   :  { %v957_v62 = vmax.f32 %v893_v8, 0.0  ;;  %v861_v29 = vmul.f32 %v2320_v22, %v771_v35 }
 0x177   :  { %v925_v28 = vadd.f32 %v861_v29, %v536_v20  ;;  %1625 = vmatprep.mubr.f32.mxu0 %v957_v62  ;;  %v541_v62 = vadd.f32 %v2328_v17, %v471_v63 }
 0x178   :  { %v775_v42 = vpop.permute.xlu1 %774  ;;  %1626 = vmatmul.mubr.f32.gmra.mxu0 %v958_v33 }
 0x179   :  { %v989_v10 = vmax.f32 %v925_v28, 0.0  ;;  %v862_v1 = vmul.f32 %v2320_v22, %v775_v42  ;;  %v671_v42 = vpop.permute.xlu0 %670 }
 0x17a   :  { %v836_v3 = vmul.f32 %v2320_v22, %v671_v42 }
 0x17b   :  { %v926_v55 = vadd.f32 %v862_v1, %v537_v54  ;;  %1673 = vmatprep.mubr.f32.mxu1 %v989_v10  ;;  %v2953_v1 = vld [vmem:[#allocation16_spill] sm:$0xff] }
 0x17d   :  { %v990_v53 = vmax.f32 %v926_v55, 0.0  ;;  %v379_v56 = vpop.permute.xlu1 %378  ;;  %v441_v55 = vmul.f32 %v2312_v2, %v2953_v1 }
 0x17e   :  { %v468_v40 = vmul.f32 %v2312_v2, %v379_v56  ;;  %v2628_v56 = vld [vmem:[%s2901_s4] ss:$0 sm:$0xff] }
 0x17f   :  { %1674 = vmatmul.mubr.f32.gmra.mxu1 %v990_v53  ;;  %v440_v53 = vmul.f32 %v2312_v2, %v2954_v4  ;;  %v511_v41 = vadd.f32 %v2328_v17, %v441_v55 }
 0x180   :  { %v538_v45 = vadd.f32 %v2328_v17, %v468_v40 }
 0x181   :  { %v510_v23 = vadd.f32 %v2328_v17, %v440_v53 }
 0x182   :  { %v651_v60 = vpop.permute.xlu1 %650 }
 0x183   :  { %v831_v46 = vmul.f32 %v2320_v22, %v651_v60 }
 0x185   :  { %v895_v6 = vadd.f32 %v831_v46, %v506_v13  ;;  %v900_v46 = vadd.f32 %v836_v3, %v511_v41 }
 0x186   :  { %v779_v15 = vpop.permute.xlu1 %778 }
 0x187   :  { %v959_v12 = vmax.f32 %v895_v6, 0.0  ;;  %v863_v43 = vmul.f32 %v2320_v22, %v779_v15 }
 0x189   :  { %v927_v5 = vadd.f32 %v863_v43, %v538_v45  ;;  %1628 = vmatprep.mubr.f32.mxu0 %v959_v12 }
 0x18a   :  { %v783_v58 = vpop.permute.xlu1 %782  ;;  %1629 = vmatmul.mubr.f32.gmra.mxu0 %v960_v61  ;;  %v964_v61 = vmax.f32 %v900_v46, 0.0 }
 0x18b   :  { %v991_v27 = vmax.f32 %v927_v5, 0.0  ;;  %v864_v16 = vmul.f32 %v2320_v22, %v783_v58 }
 0x18d   :  { %v928_v59 = vadd.f32 %v864_v16, %v539_v0  ;;  %1676 = vmatprep.mubr.f32.mxu1 %v991_v27  ;;  %v543_v0 = vadd.f32 %v2328_v17, %v473_v18 }
 0x18f   :  { %v992_v24 = vmax.f32 %v928_v59, 0.0  ;;  %v389_v51 = vpop.permute.xlu1 %388 }
 0x190   :  { %v470_v36 = vmul.f32 %v2312_v2, %v389_v51 }
 0x191   :  { %1677 = vmatmul.mubr.f32.gmra.mxu1 %v992_v24 }
 0x192   :  { %v540_v47 = vadd.f32 %v2328_v17, %v470_v36 }
 0x194   :  { %v659_v25 = vpop.permute.xlu1 %658 }
 0x195   :  { %v833_v30 = vmul.f32 %v2320_v22, %v659_v25 }
 0x197   :  { %v897_v50 = vadd.f32 %v833_v30, %v508_v19 }
 0x198   :  { %v787_v38 = vpop.permute.xlu1 %786 }
 0x199   :  { %v961_v8 = vmax.f32 %v897_v50, 0.0  ;;  %v865_v35 = vmul.f32 %v2320_v22, %v787_v38 }
 0x19b   :  { %v929_v37 = vadd.f32 %v865_v35, %v540_v47  ;;  %1631 = vmatprep.mubr.f32.mxu0 %v961_v8 }
 0x19c   :  { %v791_v20 = vpop.permute.xlu1 %790  ;;  %1632 = vmatmul.mubr.f32.gmra.mxu0 %v962_v7 }
 0x19d   :  { %v993_v29 = vmax.f32 %v929_v37, 0.0  ;;  %v866_v33 = vmul.f32 %v2320_v22, %v791_v20 }
 0x19f   :  { %v930_v28 = vadd.f32 %v866_v33, %v541_v62  ;;  %1679 = vmatprep.mubr.f32.mxu1 %v993_v29 }
 0x1a1   :  { %v994_v54 = vmax.f32 %v930_v28, 0.0  ;;  %v399_v10 = vpop.permute.xlu1 %398 }
 0x1a2   :  { %v472_v60 = vmul.f32 %v2312_v2, %v399_v10 }
 0x1a3   :  { %1680 = vmatmul.mubr.f32.gmra.mxu1 %v994_v54 }
 0x1a4   :  { %v542_v45 = vadd.f32 %v2328_v17, %v472_v60 }
 0x1a5   :  { %v1591_v21 = vpop.f32.mrf.mxu0 }
 0x1a6   :  { %v1092_v39 = vadd.f32 %v1591_v21, %v2628_v56  ;;  %v667_v52 = vpop.permute.xlu1 %666 }
 0x1a7   :  { %v835_v13 = vmul.f32 %v2320_v22, %v667_v52  ;;  %v1086_v40 = vpop.f32.mrf.mxu0 }
 0x1a8   :  { %1406 = vst [vmem:[%s2902_s5 + $0x8] sm:$0xff] %v1092_v39  ;;  %v1087_v26 = vadd.f32 %v2628_v56, %v1086_v40 }
 0x1a9   :  { %v899_v6 = vadd.f32 %v835_v13, %v510_v23 }
 0x1aa   :  { %1405 = vst [vmem:[%s2902_s5] sm:$0xff] %v1087_v26  ;;  %v795_v15 = vpop.permute.xlu1 %794 }
 0x1ab   :  { %v963_v12 = vmax.f32 %v899_v6, 0.0  ;;  %v867_v43 = vmul.f32 %v2320_v22, %v795_v15 }
 0x1ad   :  { %v931_v5 = vadd.f32 %v867_v43, %v542_v45  ;;  %1634 = vmatprep.mubr.f32.mxu0 %v963_v12 }
 0x1ae   :  { %v799_v58 = vpop.permute.xlu1 %798  ;;  %1635 = vmatmul.mubr.f32.gmra.mxu0 %v964_v61 }
 0x1af   :  { %v995_v27 = vmax.f32 %v931_v5, 0.0  ;;  %v868_v16 = vmul.f32 %v2320_v22, %v799_v58 }
 0x1b1   :  { %v932_v59 = vadd.f32 %v868_v16, %v543_v0  ;;  %1682 = vmatprep.mubr.f32.mxu1 %v995_v27 }
 0x1b3   :  { %v996_v57 = vmax.f32 %v932_v59, 0.0 }
 0x1b5   :  { %1683 = vmatmul.mubr.f32.gmra.mxu1 %v996_v57 }
 0x1ca   :  { %v1639_v2 = vpop.f32.mrf.mxu1 }
 0x1cb   :  { %v1252_v24 = vadd.f32 %v1639_v2, %v2628_v56 }
 0x1cc   :  { %v1246_v51 = vpop.f32.mrf.mxu1 }
 0x1cd   :  { %1438 = vst [vmem:[%s2902_s5 + $0x108] sm:$0xff] %v1252_v24  ;;  %v1247_v9 = vadd.f32 %v2628_v56, %v1246_v51 }
 0x1ce   :  { %v1642_v48 = vpop.f32.mrf.mxu1 }
 0x1cf   :  { %1437 = vst [vmem:[%s2902_s5 + $0x100] sm:$0xff] %v1247_v9  ;;  %v1262_v22 = vadd.f32 %v1642_v48, %v2628_v56 }
 0x1d0   :  { %v1256_v17 = vpop.f32.mrf.mxu1 }
 0x1d1   :  { %1440 = vst [vmem:[%s2902_s5 + $0x118] sm:$0xff] %v1262_v22  ;;  %v1257_v32 = vadd.f32 %v2628_v56, %v1256_v17  ;;  %v1594_v49 = vpop.f32.mrf.mxu0 }
 0x1d2   :  { %v1102_v44 = vadd.f32 %v1594_v49, %v2628_v56  ;;  %v1645_v31 = vpop.f32.mrf.mxu1 }
 0x1d3   :  { %1439 = vst [vmem:[%s2902_s5 + $0x110] sm:$0xff] %v1257_v32  ;;  %v1272_v25 = vadd.f32 %v1645_v31, %v2628_v56  ;;  %v1096_v19 = vpop.f32.mrf.mxu0 }
 0x1d4   :  { %1408 = vst [vmem:[%s2902_s5 + $0x18] sm:$0xff] %v1102_v44  ;;  %v1097_v36 = vadd.f32 %v2628_v56, %v1096_v19  ;;  %v1266_v30 = vpop.f32.mrf.mxu1 }
 0x1d5   :  { %1442 = vst [vmem:[%s2902_s5 + $0x128] sm:$0xff] %v1272_v25  ;;  %v1267_v34 = vadd.f32 %v2628_v56, %v1266_v30 }
 0x1d6   :  { %1407 = vst [vmem:[%s2902_s5 + $0x10] sm:$0xff] %v1097_v36  ;;  %v1648_v50 = vpop.f32.mrf.mxu1 }
 0x1d7   :  { %1441 = vst [vmem:[%s2902_s5 + $0x120] sm:$0xff] %v1267_v34  ;;  %v1282_v38 = vadd.f32 %v1648_v50, %v2628_v56 }
 0x1d8   :  { %v1276_v14 = vpop.f32.mrf.mxu1 }
 0x1d9   :  { %1444 = vst [vmem:[%s2902_s5 + $0x138] sm:$0xff] %v1282_v38  ;;  %v1277_v63 = vadd.f32 %v2628_v56, %v1276_v14  ;;  %v1597_v47 = vpop.f32.mrf.mxu0 }
 0x1da   :  { %v1112_v8 = vadd.f32 %v1597_v47, %v2628_v56  ;;  %v1651_v35 = vpop.f32.mrf.mxu1 }
 0x1db   :  { %1443 = vst [vmem:[%s2902_s5 + $0x130] sm:$0xff] %v1277_v63  ;;  %v1292_v7 = vadd.f32 %v1651_v35, %v2628_v56  ;;  %v1106_v37 = vpop.f32.mrf.mxu0 }
 0x1dc   :  { %1410 = vst [vmem:[%s2902_s5 + $0x28] sm:$0xff] %v1112_v8  ;;  %v1107_v20 = vadd.f32 %v2628_v56, %v1106_v37  ;;  %v1286_v62 = vpop.f32.mrf.mxu1 }
 0x1dd   :  { %1446 = vst [vmem:[%s2902_s5 + $0x148] sm:$0xff] %v1292_v7  ;;  %v1287_v29 = vadd.f32 %v2628_v56, %v1286_v62 }
 0x1de   :  { %1409 = vst [vmem:[%s2902_s5 + $0x20] sm:$0xff] %v1107_v20  ;;  %v1654_v33 = vpop.f32.mrf.mxu1 }
 0x1df   :  { %1445 = vst [vmem:[%s2902_s5 + $0x140] sm:$0xff] %v1287_v29  ;;  %v1302_v28 = vadd.f32 %v1654_v33, %v2628_v56 }
 0x1e0   :  { %v1296_v42 = vpop.f32.mrf.mxu1 }
 0x1e1   :  { %1448 = vst [vmem:[%s2902_s5 + $0x158] sm:$0xff] %v1302_v28  ;;  %v1297_v54 = vadd.f32 %v2628_v56, %v1296_v42  ;;  %v1600_v10 = vpop.f32.mrf.mxu0 }
 0x1e2   :  { %v1122_v1 = vadd.f32 %v1600_v10, %v2628_v56  ;;  %v1657_v55 = vpop.f32.mrf.mxu1 }
 0x1e3   :  { %1447 = vst [vmem:[%s2902_s5 + $0x150] sm:$0xff] %v1297_v54  ;;  %v1312_v4 = vadd.f32 %v1657_v55, %v2628_v56  ;;  %v1116_v53 = vpop.f32.mrf.mxu0 }
 0x1e4   :  { %1412 = vst [vmem:[%s2902_s5 + $0x38] sm:$0xff] %v1122_v1  ;;  %v1117_v3 = vadd.f32 %v2628_v56, %v1116_v53  ;;  %v1306_v21 = vpop.f32.mrf.mxu1 }
 0x1e5   :  { %1450 = vst [vmem:[%s2902_s5 + $0x168] sm:$0xff] %v1312_v4  ;;  %v1307_v41 = vadd.f32 %v2628_v56, %v1306_v21 }
 0x1e6   :  { %1411 = vst [vmem:[%s2902_s5 + $0x30] sm:$0xff] %v1117_v3  ;;  %v1660_v39 = vpop.f32.mrf.mxu1 }
 0x1e7   :  { %1449 = vst [vmem:[%s2902_s5 + $0x160] sm:$0xff] %v1307_v41  ;;  %v1322_v52 = vadd.f32 %v1660_v39, %v2628_v56 }
 0x1e8   :  { %v1316_v23 = vpop.f32.mrf.mxu1 }
 0x1e9   :  { %1452 = vst [vmem:[%s2902_s5 + $0x178] sm:$0xff] %v1322_v52  ;;  %v1317_v60 = vadd.f32 %v2628_v56, %v1316_v23  ;;  %v1603_v13 = vpop.f32.mrf.mxu0 }
 0x1ea   :  { %v1132_v40 = vadd.f32 %v1603_v13, %v2628_v56 }
 0x1eb   :  { %1451 = vst [vmem:[%s2902_s5 + $0x170] sm:$0xff] %v1317_v60  ;;  %v1126_v46 = vpop.f32.mrf.mxu0 }
 0x1ec   :  { %1414 = vst [vmem:[%s2902_s5 + $0x48] sm:$0xff] %v1132_v40  ;;  %v1127_v26 = vadd.f32 %v2628_v56, %v1126_v46 }
 0x1ee   :  { %1413 = vst [vmem:[%s2902_s5 + $0x40] sm:$0xff] %v1127_v26 }
 0x1f1   :  { %v1606_v6 = vpop.f32.mrf.mxu0 }
 0x1f2   :  { %v1142_v15 = vadd.f32 %v1606_v6, %v2628_v56 }
 0x1f3   :  { %v1136_v11 = vpop.f32.mrf.mxu0 }
 0x1f4   :  { %1416 = vst [vmem:[%s2902_s5 + $0x58] sm:$0xff] %v1142_v15  ;;  %v1137_v18 = vadd.f32 %v2628_v56, %v1136_v11 }
 0x1f6   :  { %1415 = vst [vmem:[%s2902_s5 + $0x50] sm:$0xff] %v1137_v18 }
 0x1f7   :  { %v1663_v45 = vpop.f32.mrf.mxu1 }
 0x1f8   :  { %v1332_v12 = vadd.f32 %v1663_v45, %v2628_v56 }
 0x1f9   :  { %v1609_v43 = vpop.f32.mrf.mxu0  ;;  %v1326_v61 = vpop.f32.mrf.mxu1 }
 0x1fa   :  { %1454 = vst [vmem:[%s2902_s5 + $0x188] sm:$0xff] %v1332_v12  ;;  %v1152_v5 = vadd.f32 %v1609_v43, %v2628_v56  ;;  %v1327_v58 = vadd.f32 %v2628_v56, %v1326_v61 }
 0x1fb   :  { %v1146_v0 = vpop.f32.mrf.mxu0 }
 0x1fc   :  { %1418 = vst [vmem:[%s2902_s5 + $0x68] sm:$0xff] %v1152_v5  ;;  %1453 = vst [vmem:[%s2902_s5 + $0x180] sm:$0xff] %v1327_v58  ;;  %v1147_v27 = vadd.f32 %v2628_v56, %v1146_v0 }
 0x1fd   :  { %v1612_v16 = vpop.f32.mrf.mxu0 }
 0x1fe   :  { %1417 = vst [vmem:[%s2902_s5 + $0x60] sm:$0xff] %v1147_v27  ;;  %v1162_v59 = vadd.f32 %v1612_v16, %v2628_v56 }
 0x1ff   :  { %v1156_v57 = vpop.f32.mrf.mxu0 }
 0x200   :  { %1420 = vst [vmem:[%s2902_s5 + $0x78] sm:$0xff] %v1162_v59  ;;  %v1157_v2 = vadd.f32 %v2628_v56, %v1156_v57 }
 0x201   :  { %v1615_v24 = vpop.f32.mrf.mxu0 }
 0x202   :  { %1419 = vst [vmem:[%s2902_s5 + $0x70] sm:$0xff] %v1157_v2  ;;  %v1172_v51 = vadd.f32 %v1615_v24, %v2628_v56 }
 0x203   :  { %v1166_v9 = vpop.f32.mrf.mxu0 }
 0x204   :  { %1422 = vst [vmem:[%s2902_s5 + $0x88] sm:$0xff] %v1172_v51  ;;  %v1167_v48 = vadd.f32 %v2628_v56, %v1166_v9 }
 0x205   :  { %v1618_v22 = vpop.f32.mrf.mxu0 }
 0x206   :  { %1421 = vst [vmem:[%s2902_s5 + $0x80] sm:$0xff] %v1167_v48  ;;  %v1182_v17 = vadd.f32 %v1618_v22, %v2628_v56 }
 0x207   :  { %v1176_v32 = vpop.f32.mrf.mxu0 }
 0x208   :  { %1424 = vst [vmem:[%s2902_s5 + $0x98] sm:$0xff] %v1182_v17  ;;  %v1177_v49 = vadd.f32 %v2628_v56, %v1176_v32 }
 0x209   :  { %v1666_v44 = vpop.f32.mrf.mxu1 }
 0x20a   :  { %1423 = vst [vmem:[%s2902_s5 + $0x90] sm:$0xff] %v1177_v49  ;;  %v1342_v31 = vadd.f32 %v1666_v44, %v2628_v56 }
 0x20b   :  { %v1336_v25 = vpop.f32.mrf.mxu1 }
 0x20c   :  { %1456 = vst [vmem:[%s2902_s5 + $0x198] sm:$0xff] %v1342_v31  ;;  %v1337_v19 = vadd.f32 %v2628_v56, %v1336_v25 }
 0x20e   :  { %1455 = vst [vmem:[%s2902_s5 + $0x190] sm:$0xff] %v1337_v19 }
 0x214   :  { %v1621_v36 = vpop.f32.mrf.mxu0 }
 0x215   :  { %v1192_v30 = vadd.f32 %v1621_v36, %v2628_v56 }
 0x216   :  { %v1186_v34 = vpop.f32.mrf.mxu0 }
 0x217   :  { %1426 = vst [vmem:[%s2902_s5 + $0xa8] sm:$0xff] %v1192_v30  ;;  %v1187_v50 = vadd.f32 %v2628_v56, %v1186_v34 }
 0x219   :  { %1425 = vst [vmem:[%s2902_s5 + $0xa0] sm:$0xff] %v1187_v50 }
 0x21b   :  { %v1669_v38 = vpop.f32.mrf.mxu1 }
 0x21c   :  { %v1352_v14 = vadd.f32 %v1669_v38, %v2628_v56 }
 0x21d   :  { %v1346_v63 = vpop.f32.mrf.mxu1 }
 0x21e   :  { %1458 = vst [vmem:[%s2902_s5 + $0x1a8] sm:$0xff] %v1352_v14  ;;  %v1347_v47 = vadd.f32 %v2628_v56, %v1346_v63 }
 0x220   :  { %1457 = vst [vmem:[%s2902_s5 + $0x1a0] sm:$0xff] %v1347_v47 }
 0x226   :  { %v1624_v8 = vpop.f32.mrf.mxu0 }
 0x227   :  { %v1202_v35 = vadd.f32 %v1624_v8, %v2628_v56 }
 0x228   :  { %v1196_v7 = vpop.f32.mrf.mxu0 }
 0x229   :  { %1428 = vst [vmem:[%s2902_s5 + $0xb8] sm:$0xff] %v1202_v35  ;;  %v1197_v37 = vadd.f32 %v2628_v56, %v1196_v7 }
 0x22b   :  { %1427 = vst [vmem:[%s2902_s5 + $0xb0] sm:$0xff] %v1197_v37 }
 0x22d   :  { %v1672_v20 = vpop.f32.mrf.mxu1 }
 0x22e   :  { %v1362_v62 = vadd.f32 %v1672_v20, %v2628_v56 }
 0x22f   :  { %v1356_v29 = vpop.f32.mrf.mxu1 }
 0x230   :  { %1460 = vst [vmem:[%s2902_s5 + $0x1b8] sm:$0xff] %v1362_v62  ;;  %v1357_v33 = vadd.f32 %v2628_v56, %v1356_v29 }
 0x232   :  { %1459 = vst [vmem:[%s2902_s5 + $0x1b0] sm:$0xff] %v1357_v33 }
 0x238   :  { %v1627_v28 = vpop.f32.mrf.mxu0 }
 0x239   :  { %v1212_v42 = vadd.f32 %v1627_v28, %v2628_v56 }
 0x23a   :  { %v1206_v54 = vpop.f32.mrf.mxu0 }
 0x23b   :  { %1430 = vst [vmem:[%s2902_s5 + $0xc8] sm:$0xff] %v1212_v42  ;;  %v1207_v10 = vadd.f32 %v2628_v56, %v1206_v54 }
 0x23d   :  { %1429 = vst [vmem:[%s2902_s5 + $0xc0] sm:$0xff] %v1207_v10 }
 0x23f   :  { %v1675_v1 = vpop.f32.mrf.mxu1 }
 0x240   :  { %v1372_v55 = vadd.f32 %v1675_v1, %v2628_v56 }
 0x241   :  { %v1366_v4 = vpop.f32.mrf.mxu1 }
 0x242   :  { %1462 = vst [vmem:[%s2902_s5 + $0x1c8] sm:$0xff] %v1372_v55  ;;  %v1367_v53 = vadd.f32 %v2628_v56, %v1366_v4 }
 0x244   :  { %1461 = vst [vmem:[%s2902_s5 + $0x1c0] sm:$0xff] %v1367_v53 }
 0x24a   :  { %v1630_v3 = vpop.f32.mrf.mxu0 }
 0x24b   :  { %v1222_v21 = vadd.f32 %v1630_v3, %v2628_v56 }
 0x24c   :  { %v1216_v41 = vpop.f32.mrf.mxu0 }
 0x24d   :  { %1432 = vst [vmem:[%s2902_s5 + $0xd8] sm:$0xff] %v1222_v21  ;;  %v1217_v39 = vadd.f32 %v2628_v56, %v1216_v41 }
 0x24f   :  { %1431 = vst [vmem:[%s2902_s5 + $0xd0] sm:$0xff] %v1217_v39 }
 0x251   :  { %v1678_v52 = vpop.f32.mrf.mxu1 }
 0x252   :  { %v1382_v23 = vadd.f32 %v1678_v52, %v2628_v56 }
 0x253   :  { %v1376_v60 = vpop.f32.mrf.mxu1 }
 0x254   :  { %1464 = vst [vmem:[%s2902_s5 + $0x1d8] sm:$0xff] %v1382_v23  ;;  %v1377_v13 = vadd.f32 %v2628_v56, %v1376_v60 }
 0x256   :  { %1463 = vst [vmem:[%s2902_s5 + $0x1d0] sm:$0xff] %v1377_v13 }
 0x25c   :  { %v1633_v40 = vpop.f32.mrf.mxu0 }
 0x25d   :  { %v1232_v46 = vadd.f32 %v1633_v40, %v2628_v56 }
 0x25e   :  { %v1226_v26 = vpop.f32.mrf.mxu0 }
 0x25f   :  { %1434 = vst [vmem:[%s2902_s5 + $0xe8] sm:$0xff] %v1232_v46  ;;  %v1227_v6 = vadd.f32 %v2628_v56, %v1226_v26 }
 0x261   :  { %1433 = vst [vmem:[%s2902_s5 + $0xe0] sm:$0xff] %v1227_v6 }
 0x263   :  { %v1681_v15 = vpop.f32.mrf.mxu1 }
 0x264   :  { %v1392_v11 = vadd.f32 %v1681_v15, %v2628_v56 }
 0x265   :  { %v1386_v18 = vpop.f32.mrf.mxu1 }
 0x266   :  { %1466 = vst [vmem:[%s2902_s5 + $0x1e8] sm:$0xff] %v1392_v11  ;;  %v1387_v45 = vadd.f32 %v2628_v56, %v1386_v18 }
 0x268   :  { %1465 = vst [vmem:[%s2902_s5 + $0x1e0] sm:$0xff] %v1387_v45 }
 0x26e   :  { %v1636_v12 = vpop.f32.mrf.mxu0 }
 0x26f   :  { %v1242_v43 = vadd.f32 %v1636_v12, %v2628_v56 }
 0x270   :  { %v1236_v61 = vpop.f32.mrf.mxu0 }
 0x271   :  { %1436 = vst [vmem:[%s2902_s5 + $0xf8] sm:$0xff] %v1242_v43  ;;  %v1237_v5 = vadd.f32 %v2628_v56, %v1236_v61 }
 0x273   :  { %1435 = vst [vmem:[%s2902_s5 + $0xf0] sm:$0xff] %v1237_v5 }
 0x275   :  { %v1684_v58 = vpop.f32.mrf.mxu1 }
 0x276   :  { %v1402_v0 = vadd.f32 %v1684_v58, %v2628_v56 }
 0x277   :  { %v1396_v27 = vpop.f32.mrf.mxu1 }
 0x278   :  { %1468 = vst [vmem:[%s2902_s5 + $0x1f8] sm:$0xff] %v1402_v0  ;;  %v1397_v16 = vadd.f32 %v2628_v56, %v1396_v27 }
 0x27a   :  { %1467 = vst [vmem:[%s2902_s5 + $0x1f0] sm:$0xff] %v1397_v16 }

</bundles_post_ra>
